<compile_context>
chip_gen: v6e
topology: v6e:2x2x1
jax: 0.10.0
libtpu: 0.0.40
codegen_flags: <defaults>
</compile_context>

<pallas_src>
import functools

import jax
import jax.numpy as jnp
from jax.experimental import pallas as pl
from jax.experimental.pallas import tpu as pltpu

_H1, _H2 = 512, 256     # hidden widths fixed by the PyTorch module
_LANE = 128             # TPU lane width


def _round_up(n, m):
    return ((n + m - 1) // m) * m


def _device_kind():
    try:
        return jax.devices()[0].device_kind.lower()
    except Exception:
        return ""


def _num_tensorcores():
    try:
        d = jax.devices()[0]
        n = int(getattr(d, "num_cores", 0) or 0)
        if n:
            return n
        return 2 if "v7" in d.device_kind.lower() else 1
    except Exception:
        return 1


# ----------------------------------------------------------------------------
# Kernel: one batch tile through the whole 3-layer MLP.
# ----------------------------------------------------------------------------
def _mlp_kernel(x_ref, w1_ref, b1_ref, w2_ref, b2_ref, w3_ref, b3_ref, o_ref,
                *, bf16_epilogue):
    # x arrives f32 straight from HBM; the f32->bf16 pack is a handful of VPU
    # ops hidden under the first vmatmul.
    x = x_ref[...].astype(jnp.bfloat16)

    # Layer 1: linear (BN1 scale folded into w1) + BN1 shift + ReLU.
    h1 = jnp.dot(x, w1_ref[...], preferred_element_type=jnp.float32)
    if bf16_epilogue:
        h1 = jnp.maximum(h1.astype(jnp.bfloat16) + b1_ref[...], 0.0)
    else:
        h1 = jnp.maximum(h1 + b1_ref[...], 0.0).astype(jnp.bfloat16)
    # TODO(synk): dropout (p=0.3) is identity in inference mode; training-mode
    # dropout would draw a mask with pltpu.prng_seed / pltpu.prng_random_bits.

    # Layer 2: linear (BN2 scale folded into w2) + BN2 shift + ReLU.
    h2 = jnp.dot(h1, w2_ref[...], preferred_element_type=jnp.float32)
    if bf16_epilogue:
        h2 = jnp.maximum(h2.astype(jnp.bfloat16) + b2_ref[...], 0.0)
    else:
        h2 = jnp.maximum(h2 + b2_ref[...], 0.0).astype(jnp.bfloat16)

    # Layer 3: linear + bias -> lane-padded logits, stored in o_ref's dtype
    # (bf16 by default: lane-dense unmasked vst at half the f32 bytes).
    logits = jnp.dot(h2, w3_ref[...], preferred_element_type=jnp.float32)
    o_ref[...] = (logits + b3_ref[...]).astype(o_ref.dtype)
    # TODO(synk): v5e-only micro-opt: split the tile into 128-row sub-tiles
    # with lax.fori_loop(unroll=True) so each layer's VPU epilogue overlaps the
    # next sub-tile's vmatmul (MXU-bound regime on v5e).


# ----------------------------------------------------------------------------
# Wrapper: parameter folding / padding + batch tiling.
# ----------------------------------------------------------------------------
def nonlinear_classifier(x, params, *, tile_b=1024, out_dtype=jnp.bfloat16,
                         return_padded=False):
    """x: [B, input_dim] float32. Returns logits [B, num_classes] (out_dtype)."""
    w1, s1, b1, w2, s2, b2, w3, b3 = params
    B, D = x.shape
    C = w3.shape[1]

    bf16_epilogue = "v5" not in _device_kind()   # v5 has no bf16 VALU

    # ---- parameter prep (tiny, plain XLA ops outside the kernel) -----------
    # Fold BN scales into the preceding linear weights (exact, inference mode).
    w1p = (w1 * s1).astype(jnp.bfloat16)                    # [D, 512]
    w2p = (w2 * s2).astype(jnp.bfloat16)                    # [512, 256]
    Cp = _round_up(C, _LANE)                                # lane-dense logits
    w3p = jnp.pad(w3, ((0, 0), (0, Cp - C))).astype(jnp.bfloat16)
    bias_dt = jnp.bfloat16 if bf16_epilogue else jnp.float32
    b1p = b1.astype(bias_dt)
    b2p = b2.astype(bias_dt)
    b3p = jnp.pad(b3, ((0, 0), (0, Cp - C))).astype(jnp.float32)

    # ---- batch tiling (no batch padding: partial last block is masked) -----
    tb = min(tile_b, _round_up(B, 8))
    # Only chips with >= 2 TensorCores (v7x) benefit from halving the tile so
    # the "parallel" grid axis has >= 2 steps to shard across cores.
    if _num_tensorcores() >= 2 and B >= 2 * _LANE and pl.cdiv(B, tb) < 2:
        tb = min(tile_b, _round_up(pl.cdiv(B, 2), 8))
    grid = (pl.cdiv(B, tb),)

    kernel = functools.partial(_mlp_kernel, bf16_epilogue=bf16_epilogue)

    def _run(single_buffer_consts):
        def const(a):   # whole-array block, never re-fetched
            nd = a.ndim
            idx = lambda i, _nd=nd: (0,) * _nd
            if single_buffer_consts:
                return pl.BlockSpec(a.shape, idx, pipeline_mode=pl.Buffered(1))
            return pl.BlockSpec(a.shape, idx)

        return pl.pallas_call(
            kernel,
            out_shape=jax.ShapeDtypeStruct((B, Cp), out_dtype),
            grid_spec=pltpu.PrefetchScalarGridSpec(
                num_scalar_prefetch=0,
                grid=grid,
                in_specs=[
                    pl.BlockSpec((tb, D), lambda i: (i, 0)),   # x batch tile
                    const(w1p), const(b1p),
                    const(w2p), const(b2p),
                    const(w3p), const(b3p),
                ],
                out_specs=pl.BlockSpec((tb, Cp), lambda i: (i, 0)),
            ),
            compiler_params=pltpu.CompilerParams(
                dimension_semantics=("parallel",)),
        )(x, w1p, b1p, w2p, b2p, w3p, b3p)

    try:
        out = _run(True)            # single-buffered constant blocks
    except Exception:               # pipeline_mode unsupported on this build
        out = _run(False)

    if return_padded:
        return out                  # (B, Cp); caller slices / fuses downstream
    return out[:, :C]


# ----------------------------------------------------------------------------
# Deterministic test parameters mirroring the PyTorch module.
# ----------------------------------------------------------------------------
def _kaiming_uniform(key, out_dim, in_dim):
    # torch.nn.init.kaiming_uniform_ with default a=0: bound = sqrt(2)*sqrt(3/fan_in).
    bound = jnp.sqrt(2.0) * jnp.sqrt(3.0 / in_dim)
    # Stored already transposed: [in_dim, out_dim] so the kernel does x @ W.
    return jax.random.uniform(key, (in_dim, out_dim), jnp.float32, -bound, bound)


def _bn_fold(kg, kb, km, kv, dim, eps):
    gamma = 1.0 + 0.1 * jax.random.normal(kg, (dim,), jnp.float32)
    beta = 0.1 * jax.random.normal(kb, (dim,), jnp.float32)
    mean = 0.1 * jax.random.normal(km, (dim,), jnp.float32)
    var = jnp.abs(jax.random.normal(kv, (dim,), jnp.float32)) + 0.5
    scale = gamma / jnp.sqrt(var + eps)
    shift = beta - mean * scale
    return scale.reshape(1, dim), shift.reshape(1, dim)


def make_params(key, input_dim, num_classes, h1=_H1, h2=_H2, eps=1e-5):
    ks = jax.random.split(key, 11)
    w1 = _kaiming_uniform(ks[0], h1, input_dim)
    w2 = _kaiming_uniform(ks[1], h2, h1)
    w3 = _kaiming_uniform(ks[2], num_classes, h2)
    b3 = jnp.zeros((1, num_classes), jnp.float32)   # linear3 bias init to 0
    s1, sh1 = _bn_fold(ks[3], ks[4], ks[5], ks[6], h1, eps)
    s2, sh2 = _bn_fold(ks[7], ks[8], ks[9], ks[10], h2, eps)
    return (w1, s1, sh1, w2, s2, sh2, w3, b3)


def _reference(x, params):
    """Pure-f32 reference of the original (unfolded, unpadded) module."""
    w1, s1, b1, w2, s2, b2, w3, b3 = params
    h1 = jnp.maximum(x @ w1 * s1 + b1, 0.0)
    h2 = jnp.maximum(h1 @ w2 * s2 + b2, 0.0)
    return h2 @ w3 + b3


if __name__ == "__main__":
    key = jax.random.PRNGKey(0)
    kx, kp = jax.random.split(key)

    batch, input_dim, num_classes = 16, 64, 10
    x = jax.random.normal(kx, (batch, input_dim), jnp.float32)
    params = make_params(kp, input_dim, num_classes)

    out = jax.block_until_ready(nonlinear_classifier(x, params))
    ref = _reference(x, params)

    assert out.shape == (batch, num_classes)
    # bf16 weights / activations / logits with f32 MXU accumulation: allow a
    # small tolerance vs the pure-f32 reference (logits are O(1-5)).
    out32 = out.astype(jnp.float32)
    err = float(jnp.max(jnp.abs(out32 - ref)))
    assert jnp.allclose(out32, ref, atol=2e-1, rtol=2e-1), err
    print("KERNEL_OK")
</pallas_src>

<mosaic_0001>
module attributes {stable_mosaic.version = 11 : i64} {
  func.func @_mlp_kernel(%arg0: i32, %arg1: memref<16x64xf32, #tpu.memory_space<vmem>>, %arg2: memref<64x512xbf16, #tpu.memory_space<vmem>>, %arg3: memref<1x512xbf16, #tpu.memory_space<vmem>>, %arg4: memref<512x256xbf16, #tpu.memory_space<vmem>>, %arg5: memref<1x256xbf16, #tpu.memory_space<vmem>>, %arg6: memref<256x128xbf16, #tpu.memory_space<vmem>>, %arg7: memref<1x128xf32, #tpu.memory_space<vmem>>, %arg8: memref<16x128xbf16, #tpu.memory_space<vmem>>) attributes {dimension_semantics = [#tpu.dimension_semantics<parallel>], iteration_bounds = array<i64: 1>, scalar_prefetch = 0 : i64, scratch_operands = 0 : i64, tpu.core_type = #tpu.core_type<tc>, window_params = [{transform_indices = @transform_0, window_bounds = array<i64: 16, 64>}, {pipeline_mode = #tpu.pipeline_mode<synchronous>, transform_indices = @transform_1, window_bounds = array<i64: 64, 512>}, {pipeline_mode = #tpu.pipeline_mode<synchronous>, transform_indices = @transform_2, window_bounds = array<i64: 1, 512>}, {pipeline_mode = #tpu.pipeline_mode<synchronous>, transform_indices = @transform_3, window_bounds = array<i64: 512, 256>}, {pipeline_mode = #tpu.pipeline_mode<synchronous>, transform_indices = @transform_4, window_bounds = array<i64: 1, 256>}, {pipeline_mode = #tpu.pipeline_mode<synchronous>, transform_indices = @transform_5, window_bounds = array<i64: 256, 128>}, {pipeline_mode = #tpu.pipeline_mode<synchronous>, transform_indices = @transform_6, window_bounds = array<i64: 1, 128>}, {transform_indices = @transform_7, window_bounds = array<i64: 16, 128>}]} {
    %c0 = arith.constant 0 : index
    %c0_0 = arith.constant 0 : index
    %0 = vector.load %arg1[%c0, %c0_0] : memref<16x64xf32, #tpu.memory_space<vmem>>, vector<16x64xf32>
    %1 = arith.truncf %0 : vector<16x64xf32> to vector<16x64xbf16>
    %c0_1 = arith.constant 0 : index
    %c0_2 = arith.constant 0 : index
    %2 = vector.load %arg2[%c0_1, %c0_2] : memref<64x512xbf16, #tpu.memory_space<vmem>>, vector<64x512xbf16>
    %cst = arith.constant dense<0.000000e+00> : vector<16x512xf32>
    %3 = tpu.matmul %1, %2, %cst {dimension_numbers = #tpu.dot_dimension_numbers<[1], [0], [0], [1], [0, 0, 1, 1], [], []>} : vector<16x64xbf16>, vector<64x512xbf16>, vector<16x512xf32> -> vector<16x512xf32>
    %4 = arith.truncf %3 : vector<16x512xf32> to vector<16x512xbf16>
    %c0_3 = arith.constant 0 : index
    %c0_4 = arith.constant 0 : index
    %5 = vector.load %arg3[%c0_3, %c0_4] : memref<1x512xbf16, #tpu.memory_space<vmem>>, vector<1x512xbf16>
    %6 = vector.broadcast %5 : vector<1x512xbf16> to vector<16x512xbf16>
    %7 = arith.addf %4, %6 : vector<16x512xbf16>
    %cst_5 = arith.constant 0.000000e+00 : bf16
    %8 = vector.broadcast %cst_5 : bf16 to vector<16x512xbf16>
    %9 = arith.maximumf %7, %8 : vector<16x512xbf16>
    %c0_6 = arith.constant 0 : index
    %c0_7 = arith.constant 0 : index
    %10 = vector.load %arg4[%c0_6, %c0_7] : memref<512x256xbf16, #tpu.memory_space<vmem>>, vector<512x256xbf16>
    %cst_8 = arith.constant dense<0.000000e+00> : vector<16x256xf32>
    %11 = tpu.matmul %9, %10, %cst_8 {dimension_numbers = #tpu.dot_dimension_numbers<[1], [0], [0], [1], [0, 0, 1, 1], [], []>} : vector<16x512xbf16>, vector<512x256xbf16>, vector<16x256xf32> -> vector<16x256xf32>
    %12 = arith.truncf %11 : vector<16x256xf32> to vector<16x256xbf16>
    %c0_9 = arith.constant 0 : index
    %c0_10 = arith.constant 0 : index
    %13 = vector.load %arg5[%c0_9, %c0_10] : memref<1x256xbf16, #tpu.memory_space<vmem>>, vector<1x256xbf16>
    %14 = vector.broadcast %13 : vector<1x256xbf16> to vector<16x256xbf16>
    %15 = arith.addf %12, %14 : vector<16x256xbf16>
    %cst_11 = arith.constant 0.000000e+00 : bf16
    %16 = vector.broadcast %cst_11 : bf16 to vector<16x256xbf16>
    %17 = arith.maximumf %15, %16 : vector<16x256xbf16>
    %c0_12 = arith.constant 0 : index
    %c0_13 = arith.constant 0 : index
    %18 = vector.load %arg6[%c0_12, %c0_13] : memref<256x128xbf16, #tpu.memory_space<vmem>>, vector<256x128xbf16>
    %cst_14 = arith.constant dense<0.000000e+00> : vector<16x128xf32>
    %19 = tpu.matmul %17, %18, %cst_14 {dimension_numbers = #tpu.dot_dimension_numbers<[1], [0], [0], [1], [0, 0, 1, 1], [], []>} : vector<16x256xbf16>, vector<256x128xbf16>, vector<16x128xf32> -> vector<16x128xf32>
    %c0_15 = arith.constant 0 : index
    %c0_16 = arith.constant 0 : index
    %20 = vector.load %arg7[%c0_15, %c0_16] : memref<1x128xf32, #tpu.memory_space<vmem>>, vector<1x128xf32>
    %21 = vector.broadcast %20 : vector<1x128xf32> to vector<16x128xf32>
    %22 = arith.addf %19, %21 : vector<16x128xf32>
    %23 = arith.truncf %22 : vector<16x128xf32> to vector<16x128xbf16>
    %c0_17 = arith.constant 0 : index
    %c0_18 = arith.constant 0 : index
    %24 = vector.load %arg8[%c0_17, %c0_18] : memref<16x128xbf16, #tpu.memory_space<vmem>>, vector<16x128xbf16>
    tpu.vector_store %arg8[%c0_17, %c0_18], %23 {strides = array<i32>} : memref<16x128xbf16, #tpu.memory_space<vmem>>, vector<16x128xbf16>,
    return
  }
  func.func @transform_0(%arg0: i32) -> (i32, i32) {
    %c0_i32 = arith.constant 0 : i32
    %c0_i32_0 = arith.constant 0 : i32
    return %arg0, %c0_i32 : i32, i32
  }
  func.func @transform_1(%arg0: i32) -> (i32, i32) {
    %c0_i32 = arith.constant 0 : i32
    %c0_i32_0 = arith.constant 0 : i32
    %c0_i32_1 = arith.constant 0 : i32
    return %c0_i32, %c0_i32_0 : i32, i32
  }
  func.func @transform_2(%arg0: i32) -> (i32, i32) {
    %c0_i32 = arith.constant 0 : i32
    %c0_i32_0 = arith.constant 0 : i32
    %c0_i32_1 = arith.constant 0 : i32
    return %c0_i32, %c0_i32_0 : i32, i32
  }
  func.func @transform_3(%arg0: i32) -> (i32, i32) {
    %c0_i32 = arith.constant 0 : i32
    %c0_i32_0 = arith.constant 0 : i32
    %c0_i32_1 = arith.constant 0 : i32
    return %c0_i32, %c0_i32_0 : i32, i32
  }
  func.func @transform_4(%arg0: i32) -> (i32, i32) {
    %c0_i32 = arith.constant 0 : i32
    %c0_i32_0 = arith.constant 0 : i32
    %c0_i32_1 = arith.constant 0 : i32
    return %c0_i32, %c0_i32_0 : i32, i32
  }
  func.func @transform_5(%arg0: i32) -> (i32, i32) {
    %c0_i32 = arith.constant 0 : i32
    %c0_i32_0 = arith.constant 0 : i32
    %c0_i32_1 = arith.constant 0 : i32
    return %c0_i32, %c0_i32_0 : i32, i32
  }
  func.func @transform_6(%arg0: i32) -> (i32, i32) {
    %c0_i32 = arith.constant 0 : i32
    %c0_i32_0 = arith.constant 0 : i32
    %c0_i32_1 = arith.constant 0 : i32
    return %c0_i32, %c0_i32_0 : i32, i32
  }
  func.func @transform_7(%arg0: i32) -> (i32, i32) {
    %c0_i32 = arith.constant 0 : i32
    %c0_i32_0 = arith.constant 0 : i32
    return %arg0, %c0_i32 : i32, i32
  }
}

module attributes {stable_mosaic.version = 11 : i64} {
  func.func @_mlp_kernel(%arg0: i32, %arg1: memref<16x64xf32, #tpu.memory_space<vmem>>, %arg2: memref<64x512xbf16, #tpu.memory_space<vmem>>, %arg3: memref<1x512xbf16, #tpu.memory_space<vmem>>, %arg4: memref<512x256xbf16, #tpu.memory_space<vmem>>, %arg5: memref<1x256xbf16, #tpu.memory_space<vmem>>, %arg6: memref<256x128xbf16, #tpu.memory_space<vmem>>, %arg7: memref<1x128xf32, #tpu.memory_space<vmem>>, %arg8: memref<16x128xbf16, #tpu.memory_space<vmem>>) attributes {dimension_semantics = [#tpu.dimension_semantics<parallel>], iteration_bounds = array<i64: 1>, scalar_prefetch = 0 : i64, scratch_operands = 0 : i64, tpu.core_type = #tpu.core_type<tc>, window_params = [{transform_indices = @transform_0, window_bounds = array<i64: 16, 64>}, {pipeline_mode = #tpu.pipeline_mode<synchronous>, transform_indices = @transform_1, window_bounds = array<i64: 64, 512>}, {pipeline_mode = #tpu.pipeline_mode<synchronous>, transform_indices = @transform_2, window_bounds = array<i64: 1, 512>}, {pipeline_mode = #tpu.pipeline_mode<synchronous>, transform_indices = @transform_3, window_bounds = array<i64: 512, 256>}, {pipeline_mode = #tpu.pipeline_mode<synchronous>, transform_indices = @transform_4, window_bounds = array<i64: 1, 256>}, {pipeline_mode = #tpu.pipeline_mode<synchronous>, transform_indices = @transform_5, window_bounds = array<i64: 256, 128>}, {pipeline_mode = #tpu.pipeline_mode<synchronous>, transform_indices = @transform_6, window_bounds = array<i64: 1, 128>}, {transform_indices = @transform_7, window_bounds = array<i64: 16, 128>}]} {
    %c0 = arith.constant 0 : index
    %c0_0 = arith.constant 0 : index
    %0 = vector.load %arg1[%c0, %c0_0] : memref<16x64xf32, #tpu.memory_space<vmem>>, vector<16x64xf32>
    %1 = arith.truncf %0 : vector<16x64xf32> to vector<16x64xbf16>
    %c0_1 = arith.constant 0 : index
    %c0_2 = arith.constant 0 : index
    %2 = vector.load %arg2[%c0_1, %c0_2] : memref<64x512xbf16, #tpu.memory_space<vmem>>, vector<64x512xbf16>
    %cst = arith.constant dense<0.000000e+00> : vector<16x512xf32>
    %3 = tpu.matmul %1, %2, %cst {dimension_numbers = #tpu.dot_dimension_numbers<[1], [0], [0], [1], [0, 0, 1, 1], [], []>} : vector<16x64xbf16>, vector<64x512xbf16>, vector<16x512xf32> -> vector<16x512xf32>
    %4 = arith.truncf %3 : vector<16x512xf32> to vector<16x512xbf16>
    %c0_3 = arith.constant 0 : index
    %c0_4 = arith.constant 0 : index
    %5 = vector.load %arg3[%c0_3, %c0_4] : memref<1x512xbf16, #tpu.memory_space<vmem>>, vector<1x512xbf16>
    %6 = vector.broadcast %5 : vector<1x512xbf16> to vector<16x512xbf16>
    %7 = arith.addf %4, %6 : vector<16x512xbf16>
    %cst_5 = arith.constant 0.000000e+00 : bf16
    %8 = vector.broadcast %cst_5 : bf16 to vector<16x512xbf16>
    %9 = arith.maximumf %7, %8 : vector<16x512xbf16>
    %c0_6 = arith.constant 0 : index
    %c0_7 = arith.constant 0 : index
    %10 = vector.load %arg4[%c0_6, %c0_7] : memref<512x256xbf16, #tpu.memory_space<vmem>>, vector<512x256xbf16>
    %cst_8 = arith.constant dense<0.000000e+00> : vector<16x256xf32>
    %11 = tpu.matmul %9, %10, %cst_8 {dimension_numbers = #tpu.dot_dimension_numbers<[1], [0], [0], [1], [0, 0, 1, 1], [], []>} : vector<16x512xbf16>, vector<512x256xbf16>, vector<16x256xf32> -> vector<16x256xf32>
    %12 = arith.truncf %11 : vector<16x256xf32> to vector<16x256xbf16>
    %c0_9 = arith.constant 0 : index
    %c0_10 = arith.constant 0 : index
    %13 = vector.load %arg5[%c0_9, %c0_10] : memref<1x256xbf16, #tpu.memory_space<vmem>>, vector<1x256xbf16>
    %14 = vector.broadcast %13 : vector<1x256xbf16> to vector<16x256xbf16>
    %15 = arith.addf %12, %14 : vector<16x256xbf16>
    %cst_11 = arith.constant 0.000000e+00 : bf16
    %16 = vector.broadcast %cst_11 : bf16 to vector<16x256xbf16>
    %17 = arith.maximumf %15, %16 : vector<16x256xbf16>
    %c0_12 = arith.constant 0 : index
    %c0_13 = arith.constant 0 : index
    %18 = vector.load %arg6[%c0_12, %c0_13] : memref<256x128xbf16, #tpu.memory_space<vmem>>, vector<256x128xbf16>
    %cst_14 = arith.constant dense<0.000000e+00> : vector<16x128xf32>
    %19 = tpu.matmul %17, %18, %cst_14 {dimension_numbers = #tpu.dot_dimension_numbers<[1], [0], [0], [1], [0, 0, 1, 1], [], []>} : vector<16x256xbf16>, vector<256x128xbf16>, vector<16x128xf32> -> vector<16x128xf32>
    %c0_15 = arith.constant 0 : index
    %c0_16 = arith.constant 0 : index
    %20 = vector.load %arg7[%c0_15, %c0_16] : memref<1x128xf32, #tpu.memory_space<vmem>>, vector<1x128xf32>
    %21 = vector.broadcast %20 : vector<1x128xf32> to vector<16x128xf32>
    %22 = arith.addf %19, %21 : vector<16x128xf32>
    %23 = arith.truncf %22 : vector<16x128xf32> to vector<16x128xbf16>
    %c0_17 = arith.constant 0 : index
    %c0_18 = arith.constant 0 : index
    %24 = vector.load %arg8[%c0_17, %c0_18] : memref<16x128xbf16, #tpu.memory_space<vmem>>, vector<16x128xbf16>
    tpu.vector_store %arg8[%c0_17, %c0_18], %23 {strides = array<i32>} : memref<16x128xbf16, #tpu.memory_space<vmem>>, vector<16x128xbf16>,
    return
  }
  func.func @transform_0(%arg0: i32) -> (i32, i32) {
    %c0_i32 = arith.constant 0 : i32
    %c0_i32_0 = arith.constant 0 : i32
    return %arg0, %c0_i32 : i32, i32
  }
  func.func @transform_1(%arg0: i32) -> (i32, i32) {
    %c0_i32 = arith.constant 0 : i32
    %c0_i32_0 = arith.constant 0 : i32
    %c0_i32_1 = arith.constant 0 : i32
    return %c0_i32, %c0_i32_0 : i32, i32
  }
  func.func @transform_2(%arg0: i32) -> (i32, i32) {
    %c0_i32 = arith.constant 0 : i32
    %c0_i32_0 = arith.constant 0 : i32
    %c0_i32_1 = arith.constant 0 : i32
    return %c0_i32, %c0_i32_0 : i32, i32
  }
  func.func @transform_3(%arg0: i32) -> (i32, i32) {
    %c0_i32 = arith.constant 0 : i32
    %c0_i32_0 = arith.constant 0 : i32
    %c0_i32_1 = arith.constant 0 : i32
    return %c0_i32, %c0_i32_0 : i32, i32
  }
  func.func @transform_4(%arg0: i32) -> (i32, i32) {
    %c0_i32 = arith.constant 0 : i32
    %c0_i32_0 = arith.constant 0 : i32
    %c0_i32_1 = arith.constant 0 : i32
    return %c0_i32, %c0_i32_0 : i32, i32
  }
  func.func @transform_5(%arg0: i32) -> (i32, i32) {
    %c0_i32 = arith.constant 0 : i32
    %c0_i32_0 = arith.constant 0 : i32
    %c0_i32_1 = arith.constant 0 : i32
    return %c0_i32, %c0_i32_0 : i32, i32
  }
  func.func @transform_6(%arg0: i32) -> (i32, i32) {
    %c0_i32 = arith.constant 0 : i32
    %c0_i32_0 = arith.constant 0 : i32
    %c0_i32_1 = arith.constant 0 : i32
    return %c0_i32, %c0_i32_0 : i32, i32
  }
  func.func @transform_7(%arg0: i32) -> (i32, i32) {
    %c0_i32 = arith.constant 0 : i32
    %c0_i32_0 = arith.constant 0 : i32
    return %arg0, %c0_i32 : i32, i32
  }
}

</mosaic_0001>

<bundles_post_ra>
// kernel: tpu_custom_call.1
= control target key start
LH: loop header
LB: loop body
LE: loop exit
PB: predicated region body
PF: predicated region fallthrough
CT: control target
= control target key end

     0   :  { %12 = vsyncpa [#allocation3], 0  ;;  %s1586_s0 = inlined_call_operand.hbm [shape: f32[16,64], index: 0, kind: input, shape index: {}]   ;;  %s1587_s1 = inlined_call_operand.hbm [shape: bf16[64,512], index: 1, kind: input, shape index: {}]   ;;  %s1588_s2 = inlined_call_operand.hbm [shape: bf16[1,512], index: 2, kind: input, shape index: {}]   ;;  %s1589_s3 = inlined_call_operand.hbm [shape: bf16[512,256], index: 3, kind: input, shape index: {}]   ;;  %s1590_s4 = inlined_call_operand.vmem [shape: bf16[1,256], index: 4, kind: input, shape index: {}]   ;;  %s1591_s5 = inlined_call_operand.hbm [shape: bf16[256,128], index: 5, kind: input, shape index: {}]   ;;  %s1592_s6 = inlined_call_operand.vmem [shape: f32[1,128], index: 6, kind: input, shape index: {}]   ;;  %s1593_s7 = inlined_call_operand.hbm [shape: bf16[16,128], index: 7, kind: output, shape index: {}]  }
   0x1   :  { %13 = vsyncpa [#allocation6], 0 }
   0x2   :  { %14 = vsyncpa [#allocation9], 0 }
   0x3   :  { %15 = vsyncpa [#allocation4], 0  ;;  %s1478_s24 = smov [#allocation5]  }
   0x4   :  { %s33_s25 = sshll.u32 %s1478_s24, 4  ;;  %s34_s25 = int_to_ptr.vmem [resolvable:$true] %s33_s25 }
   0x5   :  { %s1358_s26 = scalar_lea.vmem %s34_s25, 2048  ;;  %p1363_p1 = scmp.lt.s32.totalorder %s34_s25, %s34_s25 }
   0x6   :  { %p1359_p0 = scmp.ne.s32.totalorder %s34_s25, %s1358_s26  ;;  %p1364_p2 = scmp.lt.s32.totalorder %s1358_s26, %s1358_s26 }
   0x8   :  { %p1365_p3 = por %p1364_p2, %p1363_p1 }
   0xa   :  { %p1366_p4 = pnand %p1365_p3, %p1359_p0 }
   0xc   :  { %1369 = shalt.err (!%p1366_p4)
}
   0xd   :  { %s1479_s27 = smov 256   ;;  %s1480_s28 = smov 16  }
   0xe   :  { %39 = dma.hbm_to_vmem [thread:$0]  %s1587_s1, 2048, %s34_s25, [#allocation6], %s1479_s27, %s1479_s27, %s1480_s28  }
   0xf   :  { %s1481_s8 = smov [#allocation8]   ;;  %s1482_s10 = smov [#allocation2]  }
  0x10   :  { %s55_s9 = sshll.u32 %s1481_s8, 4  ;;  %s21_s11 = sshll.u32 %s1482_s10, 4  ;;  %s56_s9 = int_to_ptr.vmem [resolvable:$true] %s55_s9  ;;  %s22_s11 = int_to_ptr.vmem [resolvable:$true] %s21_s11 }
  0x11   :  { %s1378_s12 = scalar_lea.vmem %s56_s9, 8192  ;;  %p1383_p6 = scmp.lt.s32.totalorder %s56_s9, %s56_s9 }
  0x12   :  { %p1379_p5 = scmp.ne.s32.totalorder %s56_s9, %s1378_s12  ;;  %p1384_p7 = scmp.lt.s32.totalorder %s1378_s12, %s1378_s12 }
  0x14   :  { %p1385_p8 = por %p1384_p7, %p1383_p6 }
  0x16   :  { %p1386_p9 = pnand %p1385_p8, %p1379_p5 }
  0x18   :  { %1389 = shalt.err (!%p1386_p9)
}
  0x19   :  { %s1483_s13 = smov 128   ;;  %s1484_s14 = smov 8  }
  0x1a   :  { %61 = dma.hbm_to_vmem [thread:$0]  %s1589_s3, 8192, %s56_s9, [#allocation9], %s1483_s13, %s1483_s13, %s1484_s14  }
  0x1b   :  { %s1398_s1 = scalar_lea.vmem %s22_s11, 256  ;;  %p1403_p11 = scmp.lt.s32.totalorder %s22_s11, %s22_s11 }
  0x1c   :  { %p1399_p10 = scmp.ne.s32.totalorder %s22_s11, %s1398_s1  ;;  %p1404_p12 = scmp.lt.s32.totalorder %s1398_s1, %s1398_s1 }
  0x1e   :  { %p1405_p13 = por %p1404_p12, %p1403_p11 }
  0x20   :  { %p1406_p0 = pnand %p1405_p13, %p1399_p10 }
  0x22   :  { %1409 = shalt.err (!%p1406_p0)
}
  0x23   :  { %27 = dma.hbm_to_vmem [thread:$0]  %s1586_s0, 256, %s22_s11, [#allocation3], %s1483_s13, %s1483_s13, %s1484_s14  }
  0x24   :  { %s1485_s19 = smov [#allocation7]   ;;  %s1486_s21 = smov [#allocation10]  }
  0x25   :  { %s46_s20 = sshll.u32 %s1485_s19, 4  ;;  %s69_s22 = sshll.u32 %s1486_s21, 4  ;;  %s47_s20 = int_to_ptr.vmem [resolvable:$true] %s46_s20  ;;  %s70_s22 = int_to_ptr.vmem [resolvable:$true] %s69_s22 }
  0x26   :  { %s1418_s23 = scalar_lea.vmem %s47_s20, 64  ;;  %p1423_p2 = scmp.lt.s32.totalorder %s47_s20, %s47_s20 }
  0x27   :  { %p1419_p1 = scmp.ne.s32.totalorder %s47_s20, %s1418_s23  ;;  %p1424_p3 = scmp.lt.s32.totalorder %s1418_s23, %s1418_s23 }
  0x29   :  { %p1425_p4 = por %p1424_p3, %p1423_p2 }
  0x2b   :  { %p1426_p5 = pnand %p1425_p4, %p1419_p1 }
  0x2d   :  { %1429 = shalt.err (!%p1426_p5)
}
  0x2e   :  { %49 = dma.hbm_to_vmem [thread:$0]  %s1588_s2, 64, %s47_s20, [#allocation6]  }
  0x2f   :  { %s1438_s25 = scalar_lea.vmem %s70_s22, 2048  ;;  %p1443_p7 = scmp.lt.s32.totalorder %s70_s22, %s70_s22 }
  0x30   :  { %p1439_p6 = scmp.ne.s32.totalorder %s70_s22, %s1438_s25  ;;  %p1444_p8 = scmp.lt.s32.totalorder %s1438_s25, %s1438_s25 }
  0x32   :  { %p1445_p9 = por %p1444_p8, %p1443_p7 }
  0x34   :  { %p1446_p10 = pnand %p1445_p9, %p1439_p6 }
  0x36   :  { %1449 = shalt.err (!%p1446_p10)
}
  0x37   :  { %s1487_s0 = smov 64   ;;  %s1488_s26 = smov 4  }
  0x38   :  { %75 = dma.hbm_to_vmem [thread:$0]  %s1591_s5, 2048, %s70_s22, [#allocation9], %s1487_s0, %s1487_s0, %s1488_s26  }
  0x39   :  { %1470 = dma.done.wait [#allocation3], 256  }
  0x3a   :  { %1471 = vsyncadd [#allocation3], 4294967040 }
  0x3b   :  { %1472 = dma.done.wait [#allocation6], 2112  }
  0x3c   :  { %1473 = vsyncadd [#allocation6], 4294965184 }
  0x3d   :  { %1474 = dma.done.wait [#allocation9], 10240  }
  0x3e   :  { %1475 = vsyncadd [#allocation9], 4294957056  ;;  %v1489_v0 = vmov 0   ;;  %v1214_v1 = vld [vmem:[#allocation5 + $0x64] ss:$16 sps:$4 sm:$0xff]   ;;  %v95_v10 = vld [vmem:[#allocation2 + $0x8] sm:$0xff] }
  0x3f   :  { %229 = vmatprep.mubr.bf16.mxu1 %v1489_v0  ;;  %v1216_v2 = vld [vmem:[#allocation5 + $0x60] ss:$16 sps:$4 sm:$0xff]   ;;  %205 = vmatprep.subr.bf16.mxu1 %v1214_v1  ;;  %v1217_v3 = vld [vmem:[#allocation5 + $0x44] ss:$16 sps:$4 sm:$0xff]   ;;  %v1228_v11 = vld [vmem:[#allocation5 + $0x6c] ss:$16 sps:$4 sm:$0xff]  }
  0x40   :  { %206 = vmatpush1.bf16.msra.mxu1 %v1216_v2  ;;  %v1219_v4 = vld [vmem:[#allocation5 + $0x40] ss:$16 sps:$4 sm:$0xff]   ;;  %v1220_v5 = vld [vmem:[#allocation5 + $0x24] ss:$16 sps:$4 sm:$0xff]   ;;  %vm193_vm0 = vcmask 523264   ;;  %s1491_s30 = smov [#allocation11]  }
  0x41   :  { %207 = vmatprep.subr.bf16.mxu1 %v1217_v3  ;;  %v1222_v6 = vld [vmem:[#allocation5 + $0x20] ss:$16 sps:$4 sm:$0xff]   ;;  %v1223_v7 = vld [vmem:[#allocation5 + $0x4] ss:$16 sps:$4 sm:$0xff]   ;;  %v1226_v16 = vld [vmem:[#allocation5 + $0x68] ss:$16 sps:$4 sm:$0xff]  }
  0x42   :  { %v1225_v8 = vld [vmem:[#allocation5] ss:$16 sps:$4 sm:$0xff]   ;;  %v1240_v13 = vld [vmem:[#allocation8 + $0x70] ss:$8 sps:$4 sm:$0xff]   ;;  %v1243_v18 = vld [vmem:[#allocation8 + $0x60] ss:$8 sps:$4 sm:$0xff]  }
  0x43   :  { %v94_v9 = vld [vmem:[#allocation2] sm:$0xff]  ;;  %v1238_v12 = vld [vmem:[#allocation8 + $0x74] ss:$8 sps:$4 sm:$0xff]   ;;  %v1231_v17 = vld [vmem:[#allocation5 + $0x4c] ss:$16 sps:$4 sm:$0xff]   ;;  %s1054_s8 = sshll.u32 %s1491_s30, 4  ;;  %s1055_s8 = int_to_ptr.vmem [resolvable:$true] %s1054_s8 }
  0x44   :  { %208 = vmatpush1.bf16.msra.mxu1 %v1219_v4  ;;  %v1241_v14 = vld [vmem:[#allocation8 + $0x64] ss:$8 sps:$4 sm:$0xff]   ;;  %v96_v15 = vpack.c.bf16 %v95_v10, %v94_v9  ;;  %733 = vmatprep.subr.bf16.mxu0 %v1238_v12  ;;  %v1244_v19 = vld [vmem:[#allocation8 + $0x54] ss:$8 sps:$4 sm:$0xff]   ;;  %v1234_v21 = vld [vmem:[#allocation5 + $0x2c] ss:$16 sps:$4 sm:$0xff]   ;;  %p1455_p12 = scmp.lt.s32.totalorder %s1055_s8, %s1055_s8 }
  0x45   :  { %209 = vmatprep.subr.bf16.mxu1 %v1220_v5  ;;  %734 = vmatpush1.bf16.msra.mxu0 %v1240_v13  ;;  %v1229_v20 = vld [vmem:[#allocation5 + $0x48] ss:$16 sps:$4 sm:$0xff]   ;;  %v1246_v22 = vld [vmem:[#allocation8 + $0x50] ss:$8 sps:$4 sm:$0xff]   ;;  %v1249_v26 = vld [vmem:[#allocation8 + $0x40] ss:$8 sps:$4 sm:$0xff]  }
  0x46   :  { %735 = vmatprep.subr.bf16.mxu0 %v1241_v14  ;;  %v1247_v23 = vld [vmem:[#allocation8 + $0x44] ss:$8 sps:$4 sm:$0xff]   ;;  %v1237_v25 = vld [vmem:[#allocation5 + $0xc] ss:$16 sps:$4 sm:$0xff]   ;;  %v1250_v27 = vld [vmem:[#allocation8 + $0x34] ss:$8 sps:$4 sm:$0xff]  }
  0x47   :  { %v1232_v24 = vld [vmem:[#allocation5 + $0x28] ss:$16 sps:$4 sm:$0xff]   ;;  %v1255_v30 = vld [vmem:[#allocation8 + $0x30] ss:$8 sps:$4 sm:$0xff]   ;;  %v1261_v34 = vld [vmem:[#allocation8 + $0x20] ss:$8 sps:$4 sm:$0xff]  }
  0x48   :  { %210 = vmatpush1.bf16.msra.mxu1 %v1222_v6  ;;  %v1235_v28 = vld [vmem:[#allocation5 + $0x8] ss:$16 sps:$4 sm:$0xff]   ;;  %v1252_v32 = vld [vmem:[#allocation8 + $0x170] ss:$8 sps:$4 sm:$0xff]   ;;  %v1258_v36 = vld [vmem:[#allocation8 + $0x160] ss:$8 sps:$4 sm:$0xff]  }
  0x49   :  { %211 = vmatprep.subr.bf16.mxu1 %v1223_v7  ;;  %736 = vmatpush1.bf16.msra.mxu0 %v1243_v18  ;;  %v1254_v29 = vld [vmem:[#allocation8 + $0x174] ss:$8 sps:$4 sm:$0xff]   ;;  %v1256_v31 = vld [vmem:[#allocation8 + $0x24] ss:$8 sps:$4 sm:$0xff]   ;;  %v1267_v38 = vld [vmem:[#allocation8 + $0x10] ss:$8 sps:$4 sm:$0xff]  }
  0x4a   :  { %737 = vmatprep.subr.bf16.mxu0 %v1244_v19  ;;  %v1260_v33 = vld [vmem:[#allocation8 + $0x164] ss:$8 sps:$4 sm:$0xff]   ;;  %v1262_v35 = vld [vmem:[#allocation8 + $0x14] ss:$8 sps:$4 sm:$0xff]   ;;  %v1264_v40 = vld [vmem:[#allocation8 + $0x150] ss:$8 sps:$4 sm:$0xff]  }
  0x4b   :  { %v1266_v37 = vld [vmem:[#allocation8 + $0x154] ss:$8 sps:$4 sm:$0xff]   ;;  %v1268_v39 = vld [vmem:[#allocation8 + $0x4] ss:$8 sps:$4 sm:$0xff]   ;;  %v1273_v42 = vld [vmem:[#allocation8] ss:$8 sps:$4 sm:$0xff]  }
  0x4c   :  { %212 = vmatpush1.bf16.msra.mxu1 %v1225_v8  ;;  %v1272_v41 = vld [vmem:[#allocation8 + $0x144] ss:$8 sps:$4 sm:$0xff]   ;;  %v1274_v43 = vld [vmem:[#allocation8 + $0xf4] ss:$8 sps:$4 sm:$0xff]   ;;  %v1270_v44 = vld [vmem:[#allocation8 + $0x140] ss:$8 sps:$4 sm:$0xff]  }
  0x4d   :  { %248 = vmatprep.subr.bf16.mxu1 %v1228_v11  ;;  %738 = vmatpush1.bf16.msra.mxu0 %v1246_v22  ;;  %v1278_v45 = vld [vmem:[#allocation8 + $0x134] ss:$8 sps:$4 sm:$0xff]   ;;  %v1279_v46 = vld [vmem:[#allocation8 + $0xf0] ss:$8 sps:$4 sm:$0xff]   ;;  %v1280_v47 = vld [vmem:[#allocation8 + $0xe4] ss:$8 sps:$4 sm:$0xff]  }
  0x4e   :  { %739 = vmatprep.subr.bf16.mxu0 %v1247_v23  ;;  %v1276_v48 = vld [vmem:[#allocation8 + $0x130] ss:$8 sps:$4 sm:$0xff]   ;;  %v1284_v49 = vld [vmem:[#allocation8 + $0x124] ss:$8 sps:$4 sm:$0xff]   ;;  %v1285_v50 = vld [vmem:[#allocation8 + $0xe0] ss:$8 sps:$4 sm:$0xff]   ;;  %v300_v23 = vlaneseq }
  0x4f   :  { %1084 = vmatmul.mubr.msk.bf16.vlgmr.msra.gmra.mxu1 %vm193_vm0, %v96_v15  ;;  %v1286_v51 = vld [vmem:[#allocation8 + $0xd4] ss:$8 sps:$4 sm:$0xff]   ;;  %v1282_v52 = vld [vmem:[#allocation8 + $0x120] ss:$8 sps:$4 sm:$0xff]   ;;  %v1291_v54 = vld [vmem:[#allocation8 + $0xd0] ss:$8 sps:$4 sm:$0xff]  }
  0x50   :  { %249 = vmatpush1.bf16.msra.mxu1 %v1226_v16  ;;  %272 = vmatprep.mubr.bf16.mxu1 %v1489_v0  ;;  %v1290_v53 = vld [vmem:[#allocation8 + $0x114] ss:$8 sps:$4 sm:$0xff]   ;;  %v1292_v55 = vld [vmem:[#allocation8 + $0xc4] ss:$8 sps:$4 sm:$0xff]   ;;  %v1288_v56 = vld [vmem:[#allocation8 + $0x110] ss:$8 sps:$4 sm:$0xff]  }
  0x51   :  { %250 = vmatprep.subr.bf16.mxu1 %v1231_v17  ;;  %740 = vmatpush1.bf16.msra.mxu0 %v1249_v26  ;;  %v1296_v57 = vld [vmem:[#allocation8 + $0x104] ss:$8 sps:$4 sm:$0xff]   ;;  %v1297_v58 = vld [vmem:[#allocation8 + $0xc0] ss:$8 sps:$4 sm:$0xff]   ;;  %v1298_v59 = vld [vmem:[#allocation8 + $0xb4] ss:$8 sps:$4 sm:$0xff]  }
  0x52   :  { %741 = vmatprep.subr.bf16.mxu0 %v1250_v27  ;;  %v1294_v60 = vld [vmem:[#allocation8 + $0x100] ss:$8 sps:$4 sm:$0xff]   ;;  %v1302_v61 = vld [vmem:[#allocation8 + $0x1f4] ss:$8 sps:$4 sm:$0xff]   ;;  %v1303_v62 = vld [vmem:[#allocation8 + $0xb0] ss:$8 sps:$4 sm:$0xff]  }
  0x53   :  { %v1300_v63 = vld [vmem:[#allocation8 + $0x1f0] ss:$8 sps:$4 sm:$0xff]   ;;  %v1304_v1 = vld [vmem:[#allocation8 + $0xa4] ss:$8 sps:$4 sm:$0xff]   ;;  %v1306_v3 = vld [vmem:[#allocation8 + $0x1e0] ss:$8 sps:$4 sm:$0xff]  }
  0x54   :  { %251 = vmatpush1.bf16.msra.mxu1 %v1229_v20  ;;  %v1308_v2 = vld [vmem:[#allocation8 + $0x1e4] ss:$8 sps:$4 sm:$0xff]   ;;  %v1309_v4 = vld [vmem:[#allocation8 + $0xa0] ss:$8 sps:$4 sm:$0xff]   ;;  %v1310_v5 = vld [vmem:[#allocation8 + $0x94] ss:$8 sps:$4 sm:$0xff]  }
  0x55   :  { %252 = vmatprep.subr.bf16.mxu1 %v1234_v21  ;;  %742 = vmatpush1.bf16.msra.mxu0 %v1255_v30  ;;  %v1314_v6 = vld [vmem:[#allocation8 + $0x1d4] ss:$8 sps:$4 sm:$0xff]   ;;  %v1312_v7 = vld [vmem:[#allocation8 + $0x1d0] ss:$8 sps:$4 sm:$0xff]   ;;  %v1316_v9 = vld [vmem:[#allocation8 + $0x84] ss:$8 sps:$4 sm:$0xff]  }
  0x56   :  { %743 = vmatprep.subr.bf16.mxu0 %v1256_v31  ;;  %v1315_v8 = vld [vmem:[#allocation8 + $0x90] ss:$8 sps:$4 sm:$0xff]   ;;  %v1318_v10 = vld [vmem:[#allocation8 + $0x1c0] ss:$8 sps:$4 sm:$0xff]   ;;  %v1320_v11 = vld [vmem:[#allocation8 + $0x1c4] ss:$8 sps:$4 sm:$0xff]  }
  0x57   :  { %v1321_v12 = vld [vmem:[#allocation8 + $0x80] ss:$8 sps:$4 sm:$0xff]   ;;  %v1324_v13 = vld [vmem:[#allocation8 + $0x1b4] ss:$8 sps:$4 sm:$0xff]   ;;  %v1322_v14 = vld [vmem:[#allocation8 + $0x1b0] ss:$8 sps:$4 sm:$0xff]  }
  0x58   :  { %253 = vmatpush1.bf16.msra.mxu1 %v1232_v24  ;;  %v1325_v16 = vld [vmem:[#allocation8 + $0x1a0] ss:$8 sps:$4 sm:$0xff]   ;;  %v1330_v17 = vld [vmem:[#allocation8 + $0x194] ss:$8 sps:$4 sm:$0xff]   ;;  %v1328_v18 = vld [vmem:[#allocation8 + $0x190] ss:$8 sps:$4 sm:$0xff]  }
  0x59   :  { %254 = vmatprep.subr.bf16.mxu1 %v1237_v25  ;;  %744 = vmatpush1.bf16.msra.mxu0 %v1261_v34  ;;  %v1333_v19 = vld [vmem:[#allocation8 + $0x184] ss:$8 sps:$4 sm:$0xff]   ;;  %v1331_v20 = vld [vmem:[#allocation8 + $0x180] ss:$8 sps:$4 sm:$0xff]   ;;  %v1490_v21 = vmov 1966171168  }
  0x5a   :  { %745 = vmatprep.subr.bf16.mxu0 %v1262_v35  ;;  %v298_v22 = vunpack.c.l.s4 %v1490_v21  ;;  %v301_v25 = vshrl.u32 %v300_v23, 7  ;;  %v1086_v26 = vld.sshfl [vmem:[#allocation7] sm:$0x33 pattern:$0x75316420]  ;;  %s1450_s9 = scalar_lea.vmem %s1055_s8, 128 }
  0x5b   :  { %p1451_p11 = scmp.ne.s32.totalorder %s1055_s8, %s1450_s9  ;;  %p1456_p13 = scmp.lt.s32.totalorder %s1450_s9, %s1450_s9 }
  0x5c   :  { %255 = vmatpush1.bf16.msra.mxu1 %v1235_v28  ;;  %v299_v24 = vunpack.c.0.s8 %v298_v22  ;;  %v296_v28 = vcombine.high %v1086_v26, %v1086_v26 }
  0x5d   :  { %776 = vmatprep.subr.bf16.mxu1 %v1254_v29  ;;  %746 = vmatpush1.bf16.msra.mxu0 %v1267_v38  ;;  %p1457_p0 = por %p1456_p13, %p1455_p12 }
  0x5e   :  { %747 = vmatprep.subr.bf16.mxu0 %v1268_v39  ;;  %v1554_v27 = vsub.s32 %v299_v24, %v301_v25 }
  0x5f   :  { %1085 = vmatmul.mubr.msk.bf16.vlgmr.msra.gmra.mxu1 %vm193_vm0, %v96_v15  ;;  %v1327_v15 = vld [vmem:[#allocation8 + $0x1a4] ss:$8 sps:$4 sm:$0xff]   ;;  %p1458_p1 = pnand %p1457_p0, %p1451_p11 }
  0x60   :  { %777 = vmatpush1.bf16.msra.mxu1 %v1252_v32  ;;  %v303_v29 = vrot.slane %v1086_v26, %v1554_v27  ;;  %v310_v30 = vrot.slane %v296_v28, %v1554_v27 }
  0x61   :  { %778 = vmatprep.subr.bf16.mxu1 %v1260_v33  ;;  %748 = vmatpush1.bf16.msra.mxu0 %v1273_v42  ;;  %v1558_v33 = vsub.s32 0, %v301_v25 }
  0x62   :  { %749 = vmatprep.subr.bf16.mxu0 %v1274_v43  ;;  %v314_v32 = vpack.i.b16 %v303_v29, %v303_v29  ;;  %v321_v34 = vpack.i.b16 %v310_v30, %v310_v30 }
  0x64   :  { %779 = vmatpush1.bf16.msra.mxu1 %v1258_v36  ;;  %v326_v39 = vrot.slane %v321_v34, %v1558_v33 }
  0x65   :  { %780 = vmatprep.subr.bf16.mxu1 %v1266_v37  ;;  %750 = vmatpush2.bf16.msra.mxu0 %v1279_v46  ;;  %v319_v37 = vrot.slane %v314_v32, %v1558_v33  ;;  %v311_v46 = vcombine.high %v303_v29, %v303_v29 }
  0x66   :  { %751 = vmatprep.subr.bf16.mxu0 %v1280_v47  ;;  %v312_v47 = vcombine.high %v310_v30, %v310_v30 }
  0x68   :  { %781 = vmatpush1.bf16.msra.mxu1 %v1264_v40 }
  0x69   :  { %782 = vmatprep.subr.bf16.mxu1 %v1272_v41  ;;  %752 = vmatpush2.bf16.msra.mxu0 %v1285_v50  ;;  %v335_v50 = vpack.i.b16 %v312_v47, %v312_v47 }
  0x6a   :  { %753 = vmatprep.subr.bf16.mxu0 %v1286_v51 }
  0x6c   :  { %783 = vmatpush1.bf16.msra.mxu1 %v1270_v44 }
  0x6d   :  { %784 = vmatprep.subr.bf16.mxu1 %v1278_v45  ;;  %754 = vmatpush2.bf16.msra.mxu0 %v1291_v54 }
  0x6e   :  { %755 = vmatprep.subr.bf16.mxu0 %v1292_v55  ;;  %v340_v55 = vrot.slane %v335_v50, %v1558_v33 }
  0x70   :  { %785 = vmatpush1.bf16.msra.mxu1 %v1276_v48 }
  0x71   :  { %786 = vmatprep.subr.bf16.mxu1 %v1284_v49  ;;  %756 = vmatpush2.bf16.msra.mxu0 %v1297_v58  ;;  %v328_v49 = vpack.i.b16 %v311_v46, %v311_v46  ;;  %v1152_v46 = vld [vmem:[%s1592_s6] ss:$0 sm:$0xff] }
  0x72   :  { %757 = vmatprep.subr.bf16.mxu0 %v1298_v59 }
  0x74   :  { %787 = vmatpush1.bf16.msra.mxu1 %v1282_v52 }
  0x75   :  { %788 = vmatprep.subr.bf16.mxu1 %v1290_v53  ;;  %758 = vmatpush2.bf16.msra.mxu0 %v1303_v62  ;;  %v333_v53 = vrot.slane %v328_v49, %v1558_v33  ;;  %v1334_v62 = vld [vmem:[#allocation10 + $0x78] sm:$0xff]  }
  0x76   :  { %759 = vmatprep.subr.bf16.mxu0 %v1304_v1  ;;  %v1336_v1 = vld [vmem:[#allocation10 + $0x70] sm:$0xff]  }
  0x78   :  { %789 = vmatpush1.bf16.msra.mxu1 %v1288_v56 }
  0x79   :  { %790 = vmatprep.subr.bf16.mxu1 %v1296_v57  ;;  %760 = vmatpush2.bf16.msra.mxu0 %v1309_v4  ;;  %v1339_v4 = vld [vmem:[#allocation10 + $0x28] sm:$0xff]  }
  0x7a   :  { %761 = vmatprep.subr.bf16.mxu0 %v1310_v5  ;;  %v1340_v5 = vld [vmem:[#allocation10 + $0x60] sm:$0xff]  }
  0x7c   :  { %791 = vmatpush1.bf16.msra.mxu1 %v1294_v60 }
  0x7d   :  { %792 = vmatprep.subr.bf16.mxu1 %v1302_v61  ;;  %762 = vmatpush2.bf16.msra.mxu0 %v1315_v8  ;;  %v1343_v8 = vld [vmem:[#allocation10 + $0x18] sm:$0xff]  }
  0x7e   :  { %763 = vmatprep.subr.bf16.mxu0 %v1316_v9  ;;  %v1344_v9 = vld [vmem:[#allocation10 + $0x50] sm:$0xff]  }
  0x80   :  { %793 = vmatpush2.bf16.msra.mxu1 %v1300_v63  ;;  %v1335_v63 = vld [vmem:[#allocation10 + $0x38] sm:$0xff]  }
  0x81   :  { %794 = vmatprep.subr.bf16.mxu1 %v1308_v2  ;;  %764 = vmatpush2.bf16.msra.mxu0 %v1321_v12  ;;  %v1337_v2 = vld [vmem:[#allocation10 + $0x30] sm:$0xff]   ;;  %v1347_v12 = vld [vmem:[#allocation10 + $0x8] sm:$0xff]  }
  0x82   :  { %1178 = vmatprep.subr.bf16.mxu0 %v1334_v62 }
  0x84   :  { %795 = vmatpush2.bf16.msra.mxu1 %v1306_v3  ;;  %v1338_v3 = vld [vmem:[#allocation10 + $0x68] sm:$0xff]  }
  0x85   :  { %796 = vmatprep.subr.bf16.mxu1 %v1314_v6  ;;  %v1341_v6 = vld [vmem:[#allocation10 + $0x20] sm:$0xff]  }
  0x88   :  { %797 = vmatpush2.bf16.msra.mxu1 %v1312_v7  ;;  %v1342_v7 = vld [vmem:[#allocation10 + $0x58] sm:$0xff]  }
  0x89   :  { %798 = vmatprep.subr.bf16.mxu1 %v1320_v11  ;;  %v1346_v11 = vld [vmem:[#allocation10 + $0x48] sm:$0xff]  }
  0x8c   :  { %799 = vmatpush2.bf16.msra.mxu1 %v1318_v10  ;;  %v1345_v10 = vld [vmem:[#allocation10 + $0x10] sm:$0xff]  }
  0x8d   :  { %800 = vmatprep.subr.bf16.mxu1 %v1324_v13  ;;  %v1348_v13 = vld [vmem:[#allocation10 + $0x40] sm:$0xff]  }
  0x90   :  { %801 = vmatpush2.bf16.msra.mxu1 %v1322_v14  ;;  %v1349_v14 = vld [vmem:[#allocation10] sm:$0xff]  }
  0x91   :  { %802 = vmatprep.subr.bf16.mxu1 %v1327_v15  ;;  %v1151_v15 = vld.sshfl [vmem:[%s1590_s4] sm:$0x11 pattern:$0x75316420] }
  0x94   :  { %803 = vmatpush2.bf16.msra.mxu1 %v1325_v16 }
  0x95   :  { %804 = vmatprep.subr.bf16.mxu1 %v1330_v17  ;;  %v830_v17 = vcombine.high %v1151_v15, %v1151_v15 }
  0x98   :  { %805 = vmatpush2.bf16.msra.mxu1 %v1328_v18 }
  0x99   :  { %806 = vmatprep.subr.bf16.mxu1 %v1333_v19  ;;  %v837_v19 = vrot.slane %v1151_v15, %v1554_v27 }
  0x9b   :  { %v846_v24 = vpack.i.b16 %v837_v19, %v837_v19 }
  0x9c   :  { %807 = vmatpush2.bf16.msra.mxu1 %v1331_v20  ;;  %v844_v20 = vrot.slane %v830_v17, %v1554_v27 }
  0x9e   :  { %v853_v25 = vpack.i.b16 %v844_v20, %v844_v20 }
 0x10f   :  { %v231_v31 = vpop.f32.mrf.mxu1 }
 0x111   :  { %v233_v35 = vpop.f32.mrf.mxu1 }
 0x113   :  { %v235_v36 = vpop.f32.mrf.mxu1 }
 0x114   :  { %v283_v38 = vpack.c.bf16 %v235_v36, %v231_v31  ;;  %v851_v31 = vrot.slane %v846_v24, %v1558_v33 }
 0x115   :  { %v237_v40 = vpop.f32.mrf.mxu1 }
 0x116   :  { %v284_v41 = vpack.c.bf16 %v237_v40, %v233_v35  ;;  %v341_v42 = vadd.bf16 %v319_v37, %v283_v38  ;;  %v858_v37 = vrot.slane %v853_v25, %v1558_v33 }
 0x118   :  { %v342_v43 = vadd.bf16 %v326_v39, %v284_v41  ;;  %v345_v45 = vmax.bf16 %v1489_v0, %v341_v42 }
 0x11a   :  { %v346_v44 = vmax.bf16 %v1489_v0, %v342_v43 }
 0x11c   :  { %765 = vmatprep.mubr.bf16.mxu0 %v346_v44 }
 0x11d   :  { %766 = vmatmul.mubr.bf16.vlgmr.msra.gmra.mxu0 %v345_v45 }
 0x11e   :  { %1179 = vmatpush3.bf16.msra.mxu0 %v1335_v63 }
 0x11f   :  { %v274_v48 = vpop.f32.mrf.mxu1  ;;  %1180 = vmatprep.subr.bf16.mxu0 %v1336_v1 }
 0x121   :  { %v276_v51 = vpop.f32.mrf.mxu1 }
 0x122   :  { %1181 = vmatpush3.bf16.msra.mxu0 %v1337_v2 }
 0x123   :  { %v278_v52 = vpop.f32.mrf.mxu1  ;;  %1182 = vmatprep.subr.bf16.mxu0 %v1338_v3 }
 0x124   :  { %v285_v54 = vpack.c.bf16 %v278_v52, %v274_v48 }
 0x125   :  { %v280_v56 = vpop.f32.mrf.mxu1 }
 0x126   :  { %v286_v57 = vpack.c.bf16 %v280_v56, %v276_v51  ;;  %v343_v58 = vadd.bf16 %v333_v53, %v285_v54  ;;  %1183 = vmatpush3.bf16.msra.mxu0 %v1339_v4 }
 0x127   :  { %1184 = vmatprep.subr.bf16.mxu0 %v1340_v5 }
 0x128   :  { %v344_v59 = vadd.bf16 %v340_v55, %v286_v57  ;;  %v347_v61 = vmax.bf16 %v1489_v0, %v343_v58 }
 0x12a   :  { %v348_v60 = vmax.bf16 %v1489_v0, %v344_v59  ;;  %1185 = vmatpush3.bf16.msra.mxu0 %v1341_v6 }
 0x12b   :  { %1186 = vmatprep.subr.bf16.mxu0 %v1342_v7 }
 0x12c   :  { %808 = vmatprep.mubr.bf16.mxu1 %v348_v60 }
 0x12d   :  { %809 = vmatmul.mubr.bf16.vlgmr.msra.gmra.mxu1 %v347_v61 }
 0x12e   :  { %1187 = vmatpush3.bf16.msra.mxu0 %v1343_v8 }
 0x12f   :  { %1188 = vmatprep.subr.bf16.mxu0 %v1344_v9 }
 0x132   :  { %1189 = vmatpush3.bf16.msra.mxu0 %v1345_v10 }
 0x133   :  { %1190 = vmatprep.subr.bf16.mxu0 %v1346_v11 }
 0x136   :  { %1191 = vmatpush3.bf16.msra.mxu0 %v1347_v12 }
 0x137   :  { %1192 = vmatprep.subr.bf16.mxu0 %v1348_v13 }
 0x13a   :  { %1193 = vmatpush3.bf16.msra.mxu0 %v1349_v14 }
 0x1dd   :  { %v767_v16 = vpop.f32.mrf.mxu0 }
 0x1df   :  { %v769_v18 = vpop.f32.mrf.mxu0 }
 0x1e1   :  { %v771_v22 = vpop.f32.mrf.mxu0 }
 0x1e3   :  { %v773_v30 = vpop.f32.mrf.mxu0 }
 0x1ed   :  { %v810_v21 = vpop.f32.mrf.mxu1 }
 0x1ee   :  { %v811_v28 = vadd.f32 %v810_v21, %v767_v16 }
 0x1ef   :  { %v812_v23 = vpop.f32.mrf.mxu1 }
 0x1f0   :  { %v813_v34 = vadd.f32 %v812_v23, %v769_v18 }
 0x1f1   :  { %v814_v26 = vpop.f32.mrf.mxu1 }
 0x1f2   :  { %v815_v29 = vadd.f32 %v814_v26, %v771_v22 }
 0x1f3   :  { %v816_v32 = vpop.f32.mrf.mxu1 }
 0x1f4   :  { %v819_v35 = vpack.c.bf16 %v815_v29, %v811_v28  ;;  %v817_v36 = vadd.f32 %v816_v32, %v773_v30 }
 0x1f6   :  { %v820_v38 = vpack.c.bf16 %v817_v36, %v813_v34  ;;  %v859_v39 = vadd.bf16 %v851_v31, %v819_v35 }
 0x1f8   :  { %v860_v27 = vadd.bf16 %v858_v37, %v820_v38  ;;  %v861_v41 = vmax.bf16 %v1489_v0, %v859_v39 }
 0x1fa   :  { %v862_v40 = vmax.bf16 %v1489_v0, %v860_v27 }
 0x1fc   :  { %1030 = vmatprep.mubr.bf16.mxu0 %v862_v40 }
 0x1fd   :  { %1031 = vmatmul.mubr.bf16.vlgmr.msra.gmra.mxu0 %v861_v41 }
 0x2bd   :  { %v1194_v42 = vpop.f32.mrf.mxu0 }
 0x2bf   :  { %v1195_v43 = vpop.f32.mrf.mxu0 }
 0x2c0   :  { %v1196_v45 = vadd.f32 %v1195_v43, %v1194_v42 }
 0x2c1   :  { %v1197_v44 = vpop.f32.mrf.mxu0 }
 0x2c2   :  { %v1033_v33 = vadd.f32 %v1196_v45, %v1152_v46 }
 0x2c3   :  { %v1198_v47 = vpop.f32.mrf.mxu0 }
 0x2c4   :  { %v1199_v48 = vadd.f32 %v1198_v47, %v1197_v44 }
 0x2c6   :  { %v1036_v49 = vadd.f32 %v1199_v48, %v1152_v46 }
 0x2c8   :  { %v1176_v50 = vpack.c.bf16 %v1036_v49, %v1033_v33 }
 0x2ca   :  { %1177 = vst [vmem:[#allocation11] sm:$0xff] %v1176_v50  }
 0x2cb   :  { %1461 = shalt.err (!%p1458_p1)
}
 0x2cc   :  { %1060 = dma.vmem_to_hbm [thread:$0]  %s1055_s8, 128, %s1593_s7, [#allocation4], %s1487_s0, %s1487_s0, %s1488_s26  }
 0x2cd   :  { %1476 = dma.done.wait [#allocation4], 128  }
 0x2ce   :  { %1477 = vsyncadd [#allocation4], 4294967168 }
 0x2cf   :  { %1064 = vsyncpa [#allocation3], 1 }
 0x2d0   :  { %1065 = vsyncpa [#allocation6], 1 }
 0x2d1   :  { %1066 = vsyncpa [#allocation9], 1 }
 0x2d2   :  { %1067 = vsyncpa [#allocation4], 1 }

// kernel: tpu_custom_call.1
= control target key start
LH: loop header
LB: loop body
LE: loop exit
PB: predicated region body
PF: predicated region fallthrough
CT: control target
= control target key end

     0   :  { %12 = vsyncpa [#allocation3], 0  ;;  %s1586_s0 = inlined_call_operand.hbm [shape: f32[16,64], index: 0, kind: input, shape index: {}]   ;;  %s1587_s1 = inlined_call_operand.hbm [shape: bf16[64,512], index: 1, kind: input, shape index: {}]   ;;  %s1588_s2 = inlined_call_operand.hbm [shape: bf16[1,512], index: 2, kind: input, shape index: {}]   ;;  %s1589_s3 = inlined_call_operand.hbm [shape: bf16[512,256], index: 3, kind: input, shape index: {}]   ;;  %s1590_s4 = inlined_call_operand.vmem [shape: bf16[1,256], index: 4, kind: input, shape index: {}]   ;;  %s1591_s5 = inlined_call_operand.hbm [shape: bf16[256,128], index: 5, kind: input, shape index: {}]   ;;  %s1592_s6 = inlined_call_operand.vmem [shape: f32[1,128], index: 6, kind: input, shape index: {}]   ;;  %s1593_s7 = inlined_call_operand.hbm [shape: bf16[16,128], index: 7, kind: output, shape index: {}]  }
   0x1   :  { %13 = vsyncpa [#allocation6], 0 }
   0x2   :  { %14 = vsyncpa [#allocation9], 0 }
   0x3   :  { %15 = vsyncpa [#allocation4], 0  ;;  %s1478_s24 = smov [#allocation5]  }
   0x4   :  { %s33_s25 = sshll.u32 %s1478_s24, 4  ;;  %s34_s25 = int_to_ptr.vmem [resolvable:$true] %s33_s25 }
   0x5   :  { %s1358_s26 = scalar_lea.vmem %s34_s25, 2048  ;;  %p1363_p1 = scmp.lt.s32.totalorder %s34_s25, %s34_s25 }
   0x6   :  { %p1359_p0 = scmp.ne.s32.totalorder %s34_s25, %s1358_s26  ;;  %p1364_p2 = scmp.lt.s32.totalorder %s1358_s26, %s1358_s26 }
   0x8   :  { %p1365_p3 = por %p1364_p2, %p1363_p1 }
   0xa   :  { %p1366_p4 = pnand %p1365_p3, %p1359_p0 }
   0xc   :  { %1369 = shalt.err (!%p1366_p4)
}
   0xd   :  { %s1479_s27 = smov 256   ;;  %s1480_s28 = smov 16  }
   0xe   :  { %39 = dma.hbm_to_vmem [thread:$0]  %s1587_s1, 2048, %s34_s25, [#allocation6], %s1479_s27, %s1479_s27, %s1480_s28  }
   0xf   :  { %s1481_s8 = smov [#allocation8]   ;;  %s1482_s10 = smov [#allocation2]  }
  0x10   :  { %s55_s9 = sshll.u32 %s1481_s8, 4  ;;  %s21_s11 = sshll.u32 %s1482_s10, 4  ;;  %s56_s9 = int_to_ptr.vmem [resolvable:$true] %s55_s9  ;;  %s22_s11 = int_to_ptr.vmem [resolvable:$true] %s21_s11 }
  0x11   :  { %s1378_s12 = scalar_lea.vmem %s56_s9, 8192  ;;  %p1383_p6 = scmp.lt.s32.totalorder %s56_s9, %s56_s9 }
  0x12   :  { %p1379_p5 = scmp.ne.s32.totalorder %s56_s9, %s1378_s12  ;;  %p1384_p7 = scmp.lt.s32.totalorder %s1378_s12, %s1378_s12 }
  0x14   :  { %p1385_p8 = por %p1384_p7, %p1383_p6 }
  0x16   :  { %p1386_p9 = pnand %p1385_p8, %p1379_p5 }
  0x18   :  { %1389 = shalt.err (!%p1386_p9)
}
  0x19   :  { %s1483_s13 = smov 128   ;;  %s1484_s14 = smov 8  }
  0x1a   :  { %61 = dma.hbm_to_vmem [thread:$0]  %s1589_s3, 8192, %s56_s9, [#allocation9], %s1483_s13, %s1483_s13, %s1484_s14  }
  0x1b   :  { %s1398_s1 = scalar_lea.vmem %s22_s11, 256  ;;  %p1403_p11 = scmp.lt.s32.totalorder %s22_s11, %s22_s11 }
  0x1c   :  { %p1399_p10 = scmp.ne.s32.totalorder %s22_s11, %s1398_s1  ;;  %p1404_p12 = scmp.lt.s32.totalorder %s1398_s1, %s1398_s1 }
  0x1e   :  { %p1405_p13 = por %p1404_p12, %p1403_p11 }
  0x20   :  { %p1406_p0 = pnand %p1405_p13, %p1399_p10 }
  0x22   :  { %1409 = shalt.err (!%p1406_p0)
}
  0x23   :  { %27 = dma.hbm_to_vmem [thread:$0]  %s1586_s0, 256, %s22_s11, [#allocation3], %s1483_s13, %s1483_s13, %s1484_s14  }
  0x24   :  { %s1485_s19 = smov [#allocation7]   ;;  %s1486_s21 = smov [#allocation10]  }
  0x25   :  { %s46_s20 = sshll.u32 %s1485_s19, 4  ;;  %s69_s22 = sshll.u32 %s1486_s21, 4  ;;  %s47_s20 = int_to_ptr.vmem [resolvable:$true] %s46_s20  ;;  %s70_s22 = int_to_ptr.vmem [resolvable:$true] %s69_s22 }
  0x26   :  { %s1418_s23 = scalar_lea.vmem %s47_s20, 64  ;;  %p1423_p2 = scmp.lt.s32.totalorder %s47_s20, %s47_s20 }
  0x27   :  { %p1419_p1 = scmp.ne.s32.totalorder %s47_s20, %s1418_s23  ;;  %p1424_p3 = scmp.lt.s32.totalorder %s1418_s23, %s1418_s23 }
  0x29   :  { %p1425_p4 = por %p1424_p3, %p1423_p2 }
  0x2b   :  { %p1426_p5 = pnand %p1425_p4, %p1419_p1 }
  0x2d   :  { %1429 = shalt.err (!%p1426_p5)
}
  0x2e   :  { %49 = dma.hbm_to_vmem [thread:$0]  %s1588_s2, 64, %s47_s20, [#allocation6]  }
  0x2f   :  { %s1438_s25 = scalar_lea.vmem %s70_s22, 2048  ;;  %p1443_p7 = scmp.lt.s32.totalorder %s70_s22, %s70_s22 }
  0x30   :  { %p1439_p6 = scmp.ne.s32.totalorder %s70_s22, %s1438_s25  ;;  %p1444_p8 = scmp.lt.s32.totalorder %s1438_s25, %s1438_s25 }
  0x32   :  { %p1445_p9 = por %p1444_p8, %p1443_p7 }
  0x34   :  { %p1446_p10 = pnand %p1445_p9, %p1439_p6 }
  0x36   :  { %1449 = shalt.err (!%p1446_p10)
}
  0x37   :  { %s1487_s0 = smov 64   ;;  %s1488_s26 = smov 4  }
  0x38   :  { %75 = dma.hbm_to_vmem [thread:$0]  %s1591_s5, 2048, %s70_s22, [#allocation9], %s1487_s0, %s1487_s0, %s1488_s26  }
  0x39   :  { %1470 = dma.done.wait [#allocation3], 256  }
  0x3a   :  { %1471 = vsyncadd [#allocation3], 4294967040 }
  0x3b   :  { %1472 = dma.done.wait [#allocation6], 2112  }
  0x3c   :  { %1473 = vsyncadd [#allocation6], 4294965184 }
  0x3d   :  { %1474 = dma.done.wait [#allocation9], 10240  }
  0x3e   :  { %1475 = vsyncadd [#allocation9], 4294957056  ;;  %v1489_v0 = vmov 0   ;;  %v1214_v1 = vld [vmem:[#allocation5 + $0x64] ss:$16 sps:$4 sm:$0xff]   ;;  %v95_v10 = vld [vmem:[#allocation2 + $0x8] sm:$0xff] }
  0x3f   :  { %229 = vmatprep.mubr.bf16.mxu1 %v1489_v0  ;;  %v1216_v2 = vld [vmem:[#allocation5 + $0x60] ss:$16 sps:$4 sm:$0xff]   ;;  %205 = vmatprep.subr.bf16.mxu1 %v1214_v1  ;;  %v1217_v3 = vld [vmem:[#allocation5 + $0x44] ss:$16 sps:$4 sm:$0xff]   ;;  %v1228_v11 = vld [vmem:[#allocation5 + $0x6c] ss:$16 sps:$4 sm:$0xff]  }
  0x40   :  { %206 = vmatpush1.bf16.msra.mxu1 %v1216_v2  ;;  %v1219_v4 = vld [vmem:[#allocation5 + $0x40] ss:$16 sps:$4 sm:$0xff]   ;;  %v1220_v5 = vld [vmem:[#allocation5 + $0x24] ss:$16 sps:$4 sm:$0xff]   ;;  %vm193_vm0 = vcmask 523264   ;;  %s1491_s30 = smov [#allocation11]  }
  0x41   :  { %207 = vmatprep.subr.bf16.mxu1 %v1217_v3  ;;  %v1222_v6 = vld [vmem:[#allocation5 + $0x20] ss:$16 sps:$4 sm:$0xff]   ;;  %v1223_v7 = vld [vmem:[#allocation5 + $0x4] ss:$16 sps:$4 sm:$0xff]   ;;  %v1226_v16 = vld [vmem:[#allocation5 + $0x68] ss:$16 sps:$4 sm:$0xff]  }
  0x42   :  { %v1225_v8 = vld [vmem:[#allocation5] ss:$16 sps:$4 sm:$0xff]   ;;  %v1240_v13 = vld [vmem:[#allocation8 + $0x70] ss:$8 sps:$4 sm:$0xff]   ;;  %v1243_v18 = vld [vmem:[#allocation8 + $0x60] ss:$8 sps:$4 sm:$0xff]  }
  0x43   :  { %v94_v9 = vld [vmem:[#allocation2] sm:$0xff]  ;;  %v1238_v12 = vld [vmem:[#allocation8 + $0x74] ss:$8 sps:$4 sm:$0xff]   ;;  %v1231_v17 = vld [vmem:[#allocation5 + $0x4c] ss:$16 sps:$4 sm:$0xff]   ;;  %s1054_s8 = sshll.u32 %s1491_s30, 4  ;;  %s1055_s8 = int_to_ptr.vmem [resolvable:$true] %s1054_s8 }
  0x44   :  { %208 = vmatpush1.bf16.msra.mxu1 %v1219_v4  ;;  %v1241_v14 = vld [vmem:[#allocation8 + $0x64] ss:$8 sps:$4 sm:$0xff]   ;;  %v96_v15 = vpack.c.bf16 %v95_v10, %v94_v9  ;;  %733 = vmatprep.subr.bf16.mxu0 %v1238_v12  ;;  %v1244_v19 = vld [vmem:[#allocation8 + $0x54] ss:$8 sps:$4 sm:$0xff]   ;;  %v1234_v21 = vld [vmem:[#allocation5 + $0x2c] ss:$16 sps:$4 sm:$0xff]   ;;  %p1455_p12 = scmp.lt.s32.totalorder %s1055_s8, %s1055_s8 }
  0x45   :  { %209 = vmatprep.subr.bf16.mxu1 %v1220_v5  ;;  %734 = vmatpush1.bf16.msra.mxu0 %v1240_v13  ;;  %v1229_v20 = vld [vmem:[#allocation5 + $0x48] ss:$16 sps:$4 sm:$0xff]   ;;  %v1246_v22 = vld [vmem:[#allocation8 + $0x50] ss:$8 sps:$4 sm:$0xff]   ;;  %v1249_v26 = vld [vmem:[#allocation8 + $0x40] ss:$8 sps:$4 sm:$0xff]  }
  0x46   :  { %735 = vmatprep.subr.bf16.mxu0 %v1241_v14  ;;  %v1247_v23 = vld [vmem:[#allocation8 + $0x44] ss:$8 sps:$4 sm:$0xff]   ;;  %v1237_v25 = vld [vmem:[#allocation5 + $0xc] ss:$16 sps:$4 sm:$0xff]   ;;  %v1250_v27 = vld [vmem:[#allocation8 + $0x34] ss:$8 sps:$4 sm:$0xff]  }
  0x47   :  { %v1232_v24 = vld [vmem:[#allocation5 + $0x28] ss:$16 sps:$4 sm:$0xff]   ;;  %v1255_v30 = vld [vmem:[#allocation8 + $0x30] ss:$8 sps:$4 sm:$0xff]   ;;  %v1261_v34 = vld [vmem:[#allocation8 + $0x20] ss:$8 sps:$4 sm:$0xff]  }
  0x48   :  { %210 = vmatpush1.bf16.msra.mxu1 %v1222_v6  ;;  %v1235_v28 = vld [vmem:[#allocation5 + $0x8] ss:$16 sps:$4 sm:$0xff]   ;;  %v1252_v32 = vld [vmem:[#allocation8 + $0x170] ss:$8 sps:$4 sm:$0xff]   ;;  %v1258_v36 = vld [vmem:[#allocation8 + $0x160] ss:$8 sps:$4 sm:$0xff]  }
  0x49   :  { %211 = vmatprep.subr.bf16.mxu1 %v1223_v7  ;;  %736 = vmatpush1.bf16.msra.mxu0 %v1243_v18  ;;  %v1254_v29 = vld [vmem:[#allocation8 + $0x174] ss:$8 sps:$4 sm:$0xff]   ;;  %v1256_v31 = vld [vmem:[#allocation8 + $0x24] ss:$8 sps:$4 sm:$0xff]   ;;  %v1267_v38 = vld [vmem:[#allocation8 + $0x10] ss:$8 sps:$4 sm:$0xff]  }
  0x4a   :  { %737 = vmatprep.subr.bf16.mxu0 %v1244_v19  ;;  %v1260_v33 = vld [vmem:[#allocation8 + $0x164] ss:$8 sps:$4 sm:$0xff]   ;;  %v1262_v35 = vld [vmem:[#allocation8 + $0x14] ss:$8 sps:$4 sm:$0xff]   ;;  %v1264_v40 = vld [vmem:[#allocation8 + $0x150] ss:$8 sps:$4 sm:$0xff]  }
  0x4b   :  { %v1266_v37 = vld [vmem:[#allocation8 + $0x154] ss:$8 sps:$4 sm:$0xff]   ;;  %v1268_v39 = vld [vmem:[#allocation8 + $0x4] ss:$8 sps:$4 sm:$0xff]   ;;  %v1273_v42 = vld [vmem:[#allocation8] ss:$8 sps:$4 sm:$0xff]  }
  0x4c   :  { %212 = vmatpush1.bf16.msra.mxu1 %v1225_v8  ;;  %v1272_v41 = vld [vmem:[#allocation8 + $0x144] ss:$8 sps:$4 sm:$0xff]   ;;  %v1274_v43 = vld [vmem:[#allocation8 + $0xf4] ss:$8 sps:$4 sm:$0xff]   ;;  %v1270_v44 = vld [vmem:[#allocation8 + $0x140] ss:$8 sps:$4 sm:$0xff]  }
  0x4d   :  { %248 = vmatprep.subr.bf16.mxu1 %v1228_v11  ;;  %738 = vmatpush1.bf16.msra.mxu0 %v1246_v22  ;;  %v1278_v45 = vld [vmem:[#allocation8 + $0x134] ss:$8 sps:$4 sm:$0xff]   ;;  %v1279_v46 = vld [vmem:[#allocation8 + $0xf0] ss:$8 sps:$4 sm:$0xff]   ;;  %v1280_v47 = vld [vmem:[#allocation8 + $0xe4] ss:$8 sps:$4 sm:$0xff]  }
  0x4e   :  { %739 = vmatprep.subr.bf16.mxu0 %v1247_v23  ;;  %v1276_v48 = vld [vmem:[#allocation8 + $0x130] ss:$8 sps:$4 sm:$0xff]   ;;  %v1284_v49 = vld [vmem:[#allocation8 + $0x124] ss:$8 sps:$4 sm:$0xff]   ;;  %v1285_v50 = vld [vmem:[#allocation8 + $0xe0] ss:$8 sps:$4 sm:$0xff]   ;;  %v300_v23 = vlaneseq }
  0x4f   :  { %1084 = vmatmul.mubr.msk.bf16.vlgmr.msra.gmra.mxu1 %vm193_vm0, %v96_v15  ;;  %v1286_v51 = vld [vmem:[#allocation8 + $0xd4] ss:$8 sps:$4 sm:$0xff]   ;;  %v1282_v52 = vld [vmem:[#allocation8 + $0x120] ss:$8 sps:$4 sm:$0xff]   ;;  %v1291_v54 = vld [vmem:[#allocation8 + $0xd0] ss:$8 sps:$4 sm:$0xff]  }
  0x50   :  { %249 = vmatpush1.bf16.msra.mxu1 %v1226_v16  ;;  %272 = vmatprep.mubr.bf16.mxu1 %v1489_v0  ;;  %v1290_v53 = vld [vmem:[#allocation8 + $0x114] ss:$8 sps:$4 sm:$0xff]   ;;  %v1292_v55 = vld [vmem:[#allocation8 + $0xc4] ss:$8 sps:$4 sm:$0xff]   ;;  %v1288_v56 = vld [vmem:[#allocation8 + $0x110] ss:$8 sps:$4 sm:$0xff]  }
  0x51   :  { %250 = vmatprep.subr.bf16.mxu1 %v1231_v17  ;;  %740 = vmatpush1.bf16.msra.mxu0 %v1249_v26  ;;  %v1296_v57 = vld [vmem:[#allocation8 + $0x104] ss:$8 sps:$4 sm:$0xff]   ;;  %v1297_v58 = vld [vmem:[#allocation8 + $0xc0] ss:$8 sps:$4 sm:$0xff]   ;;  %v1298_v59 = vld [vmem:[#allocation8 + $0xb4] ss:$8 sps:$4 sm:$0xff]  }
  0x52   :  { %741 = vmatprep.subr.bf16.mxu0 %v1250_v27  ;;  %v1294_v60 = vld [vmem:[#allocation8 + $0x100] ss:$8 sps:$4 sm:$0xff]   ;;  %v1302_v61 = vld [vmem:[#allocation8 + $0x1f4] ss:$8 sps:$4 sm:$0xff]   ;;  %v1303_v62 = vld [vmem:[#allocation8 + $0xb0] ss:$8 sps:$4 sm:$0xff]  }
  0x53   :  { %v1300_v63 = vld [vmem:[#allocation8 + $0x1f0] ss:$8 sps:$4 sm:$0xff]   ;;  %v1304_v1 = vld [vmem:[#allocation8 + $0xa4] ss:$8 sps:$4 sm:$0xff]   ;;  %v1306_v3 = vld [vmem:[#allocation8 + $0x1e0] ss:$8 sps:$4 sm:$0xff]  }
  0x54   :  { %251 = vmatpush1.bf16.msra.mxu1 %v1229_v20  ;;  %v1308_v2 = vld [vmem:[#allocation8 + $0x1e4] ss:$8 sps:$4 sm:$0xff]   ;;  %v1309_v4 = vld [vmem:[#allocation8 + $0xa0] ss:$8 sps:$4 sm:$0xff]   ;;  %v1310_v5 = vld [vmem:[#allocation8 + $0x94] ss:$8 sps:$4 sm:$0xff]  }
  0x55   :  { %252 = vmatprep.subr.bf16.mxu1 %v1234_v21  ;;  %742 = vmatpush1.bf16.msra.mxu0 %v1255_v30  ;;  %v1314_v6 = vld [vmem:[#allocation8 + $0x1d4] ss:$8 sps:$4 sm:$0xff]   ;;  %v1312_v7 = vld [vmem:[#allocation8 + $0x1d0] ss:$8 sps:$4 sm:$0xff]   ;;  %v1316_v9 = vld [vmem:[#allocation8 + $0x84] ss:$8 sps:$4 sm:$0xff]  }
  0x56   :  { %743 = vmatprep.subr.bf16.mxu0 %v1256_v31  ;;  %v1315_v8 = vld [vmem:[#allocation8 + $0x90] ss:$8 sps:$4 sm:$0xff]   ;;  %v1318_v10 = vld [vmem:[#allocation8 + $0x1c0] ss:$8 sps:$4 sm:$0xff]   ;;  %v1320_v11 = vld [vmem:[#allocation8 + $0x1c4] ss:$8 sps:$4 sm:$0xff]  }
  0x57   :  { %v1321_v12 = vld [vmem:[#allocation8 + $0x80] ss:$8 sps:$4 sm:$0xff]   ;;  %v1324_v13 = vld [vmem:[#allocation8 + $0x1b4] ss:$8 sps:$4 sm:$0xff]   ;;  %v1322_v14 = vld [vmem:[#allocation8 + $0x1b0] ss:$8 sps:$4 sm:$0xff]  }
  0x58   :  { %253 = vmatpush1.bf16.msra.mxu1 %v1232_v24  ;;  %v1325_v16 = vld [vmem:[#allocation8 + $0x1a0] ss:$8 sps:$4 sm:$0xff]   ;;  %v1330_v17 = vld [vmem:[#allocation8 + $0x194] ss:$8 sps:$4 sm:$0xff]   ;;  %v1328_v18 = vld [vmem:[#allocation8 + $0x190] ss:$8 sps:$4 sm:$0xff]  }
  0x59   :  { %254 = vmatprep.subr.bf16.mxu1 %v1237_v25  ;;  %744 = vmatpush1.bf16.msra.mxu0 %v1261_v34  ;;  %v1333_v19 = vld [vmem:[#allocation8 + $0x184] ss:$8 sps:$4 sm:$0xff]   ;;  %v1331_v20 = vld [vmem:[#allocation8 + $0x180] ss:$8 sps:$4 sm:$0xff]   ;;  %v1490_v21 = vmov 1966171168  }
  0x5a   :  { %745 = vmatprep.subr.bf16.mxu0 %v1262_v35  ;;  %v298_v22 = vunpack.c.l.s4 %v1490_v21  ;;  %v301_v25 = vshrl.u32 %v300_v23, 7  ;;  %v1086_v26 = vld.sshfl [vmem:[#allocation7] sm:$0x33 pattern:$0x75316420]  ;;  %s1450_s9 = scalar_lea.vmem %s1055_s8, 128 }
  0x5b   :  { %p1451_p11 = scmp.ne.s32.totalorder %s1055_s8, %s1450_s9  ;;  %p1456_p13 = scmp.lt.s32.totalorder %s1450_s9, %s1450_s9 }
  0x5c   :  { %255 = vmatpush1.bf16.msra.mxu1 %v1235_v28  ;;  %v299_v24 = vunpack.c.0.s8 %v298_v22  ;;  %v296_v28 = vcombine.high %v1086_v26, %v1086_v26 }
  0x5d   :  { %776 = vmatprep.subr.bf16.mxu1 %v1254_v29  ;;  %746 = vmatpush1.bf16.msra.mxu0 %v1267_v38  ;;  %p1457_p0 = por %p1456_p13, %p1455_p12 }
  0x5e   :  { %747 = vmatprep.subr.bf16.mxu0 %v1268_v39  ;;  %v1554_v27 = vsub.s32 %v299_v24, %v301_v25 }
  0x5f   :  { %1085 = vmatmul.mubr.msk.bf16.vlgmr.msra.gmra.mxu1 %vm193_vm0, %v96_v15  ;;  %v1327_v15 = vld [vmem:[#allocation8 + $0x1a4] ss:$8 sps:$4 sm:$0xff]   ;;  %p1458_p1 = pnand %p1457_p0, %p1451_p11 }
  0x60   :  { %777 = vmatpush1.bf16.msra.mxu1 %v1252_v32  ;;  %v303_v29 = vrot.slane %v1086_v26, %v1554_v27  ;;  %v310_v30 = vrot.slane %v296_v28, %v1554_v27 }
  0x61   :  { %778 = vmatprep.subr.bf16.mxu1 %v1260_v33  ;;  %748 = vmatpush1.bf16.msra.mxu0 %v1273_v42  ;;  %v1558_v33 = vsub.s32 0, %v301_v25 }
  0x62   :  { %749 = vmatprep.subr.bf16.mxu0 %v1274_v43  ;;  %v314_v32 = vpack.i.b16 %v303_v29, %v303_v29  ;;  %v321_v34 = vpack.i.b16 %v310_v30, %v310_v30 }
  0x64   :  { %779 = vmatpush1.bf16.msra.mxu1 %v1258_v36  ;;  %v326_v39 = vrot.slane %v321_v34, %v1558_v33 }
  0x65   :  { %780 = vmatprep.subr.bf16.mxu1 %v1266_v37  ;;  %750 = vmatpush2.bf16.msra.mxu0 %v1279_v46  ;;  %v319_v37 = vrot.slane %v314_v32, %v1558_v33  ;;  %v311_v46 = vcombine.high %v303_v29, %v303_v29 }
  0x66   :  { %751 = vmatprep.subr.bf16.mxu0 %v1280_v47  ;;  %v312_v47 = vcombine.high %v310_v30, %v310_v30 }
  0x68   :  { %781 = vmatpush1.bf16.msra.mxu1 %v1264_v40 }
  0x69   :  { %782 = vmatprep.subr.bf16.mxu1 %v1272_v41  ;;  %752 = vmatpush2.bf16.msra.mxu0 %v1285_v50  ;;  %v335_v50 = vpack.i.b16 %v312_v47, %v312_v47 }
  0x6a   :  { %753 = vmatprep.subr.bf16.mxu0 %v1286_v51 }
  0x6c   :  { %783 = vmatpush1.bf16.msra.mxu1 %v1270_v44 }
  0x6d   :  { %784 = vmatprep.subr.bf16.mxu1 %v1278_v45  ;;  %754 = vmatpush2.bf16.msra.mxu0 %v1291_v54 }
  0x6e   :  { %755 = vmatprep.subr.bf16.mxu0 %v1292_v55  ;;  %v340_v55 = vrot.slane %v335_v50, %v1558_v33 }
  0x70   :  { %785 = vmatpush1.bf16.msra.mxu1 %v1276_v48 }
  0x71   :  { %786 = vmatprep.subr.bf16.mxu1 %v1284_v49  ;;  %756 = vmatpush2.bf16.msra.mxu0 %v1297_v58  ;;  %v328_v49 = vpack.i.b16 %v311_v46, %v311_v46  ;;  %v1152_v46 = vld [vmem:[%s1592_s6] ss:$0 sm:$0xff] }
  0x72   :  { %757 = vmatprep.subr.bf16.mxu0 %v1298_v59 }
  0x74   :  { %787 = vmatpush1.bf16.msra.mxu1 %v1282_v52 }
  0x75   :  { %788 = vmatprep.subr.bf16.mxu1 %v1290_v53  ;;  %758 = vmatpush2.bf16.msra.mxu0 %v1303_v62  ;;  %v333_v53 = vrot.slane %v328_v49, %v1558_v33  ;;  %v1334_v62 = vld [vmem:[#allocation10 + $0x78] sm:$0xff]  }
  0x76   :  { %759 = vmatprep.subr.bf16.mxu0 %v1304_v1  ;;  %v1336_v1 = vld [vmem:[#allocation10 + $0x70] sm:$0xff]  }
  0x78   :  { %789 = vmatpush1.bf16.msra.mxu1 %v1288_v56 }
  0x79   :  { %790 = vmatprep.subr.bf16.mxu1 %v1296_v57  ;;  %760 = vmatpush2.bf16.msra.mxu0 %v1309_v4  ;;  %v1339_v4 = vld [vmem:[#allocation10 + $0x28] sm:$0xff]  }
  0x7a   :  { %761 = vmatprep.subr.bf16.mxu0 %v1310_v5  ;;  %v1340_v5 = vld [vmem:[#allocation10 + $0x60] sm:$0xff]  }
  0x7c   :  { %791 = vmatpush1.bf16.msra.mxu1 %v1294_v60 }
  0x7d   :  { %792 = vmatprep.subr.bf16.mxu1 %v1302_v61  ;;  %762 = vmatpush2.bf16.msra.mxu0 %v1315_v8  ;;  %v1343_v8 = vld [vmem:[#allocation10 + $0x18] sm:$0xff]  }
  0x7e   :  { %763 = vmatprep.subr.bf16.mxu0 %v1316_v9  ;;  %v1344_v9 = vld [vmem:[#allocation10 + $0x50] sm:$0xff]  }
  0x80   :  { %793 = vmatpush2.bf16.msra.mxu1 %v1300_v63  ;;  %v1335_v63 = vld [vmem:[#allocation10 + $0x38] sm:$0xff]  }
  0x81   :  { %794 = vmatprep.subr.bf16.mxu1 %v1308_v2  ;;  %764 = vmatpush2.bf16.msra.mxu0 %v1321_v12  ;;  %v1337_v2 = vld [vmem:[#allocation10 + $0x30] sm:$0xff]   ;;  %v1347_v12 = vld [vmem:[#allocation10 + $0x8] sm:$0xff]  }
  0x82   :  { %1178 = vmatprep.subr.bf16.mxu0 %v1334_v62 }
  0x84   :  { %795 = vmatpush2.bf16.msra.mxu1 %v1306_v3  ;;  %v1338_v3 = vld [vmem:[#allocation10 + $0x68] sm:$0xff]  }
  0x85   :  { %796 = vmatprep.subr.bf16.mxu1 %v1314_v6  ;;  %v1341_v6 = vld [vmem:[#allocation10 + $0x20] sm:$0xff]  }
  0x88   :  { %797 = vmatpush2.bf16.msra.mxu1 %v1312_v7  ;;  %v1342_v7 = vld [vmem:[#allocation10 + $0x58] sm:$0xff]  }
  0x89   :  { %798 = vmatprep.subr.bf16.mxu1 %v1320_v11  ;;  %v1346_v11 = vld [vmem:[#allocation10 + $0x48] sm:$0xff]  }
  0x8c   :  { %799 = vmatpush2.bf16.msra.mxu1 %v1318_v10  ;;  %v1345_v10 = vld [vmem:[#allocation10 + $0x10] sm:$0xff]  }
  0x8d   :  { %800 = vmatprep.subr.bf16.mxu1 %v1324_v13  ;;  %v1348_v13 = vld [vmem:[#allocation10 + $0x40] sm:$0xff]  }
  0x90   :  { %801 = vmatpush2.bf16.msra.mxu1 %v1322_v14  ;;  %v1349_v14 = vld [vmem:[#allocation10] sm:$0xff]  }
  0x91   :  { %802 = vmatprep.subr.bf16.mxu1 %v1327_v15  ;;  %v1151_v15 = vld.sshfl [vmem:[%s1590_s4] sm:$0x11 pattern:$0x75316420] }
  0x94   :  { %803 = vmatpush2.bf16.msra.mxu1 %v1325_v16 }
  0x95   :  { %804 = vmatprep.subr.bf16.mxu1 %v1330_v17  ;;  %v830_v17 = vcombine.high %v1151_v15, %v1151_v15 }
  0x98   :  { %805 = vmatpush2.bf16.msra.mxu1 %v1328_v18 }
  0x99   :  { %806 = vmatprep.subr.bf16.mxu1 %v1333_v19  ;;  %v837_v19 = vrot.slane %v1151_v15, %v1554_v27 }
  0x9b   :  { %v846_v24 = vpack.i.b16 %v837_v19, %v837_v19 }
  0x9c   :  { %807 = vmatpush2.bf16.msra.mxu1 %v1331_v20  ;;  %v844_v20 = vrot.slane %v830_v17, %v1554_v27 }
  0x9e   :  { %v853_v25 = vpack.i.b16 %v844_v20, %v844_v20 }
 0x10f   :  { %v231_v31 = vpop.f32.mrf.mxu1 }
 0x111   :  { %v233_v35 = vpop.f32.mrf.mxu1 }
 0x113   :  { %v235_v36 = vpop.f32.mrf.mxu1 }
 0x114   :  { %v283_v38 = vpack.c.bf16 %v235_v36, %v231_v31  ;;  %v851_v31 = vrot.slane %v846_v24, %v1558_v33 }
 0x115   :  { %v237_v40 = vpop.f32.mrf.mxu1 }
 0x116   :  { %v284_v41 = vpack.c.bf16 %v237_v40, %v233_v35  ;;  %v341_v42 = vadd.bf16 %v319_v37, %v283_v38  ;;  %v858_v37 = vrot.slane %v853_v25, %v1558_v33 }
 0x118   :  { %v342_v43 = vadd.bf16 %v326_v39, %v284_v41  ;;  %v345_v45 = vmax.bf16 %v1489_v0, %v341_v42 }
 0x11a   :  { %v346_v44 = vmax.bf16 %v1489_v0, %v342_v43 }
 0x11c   :  { %765 = vmatprep.mubr.bf16.mxu0 %v346_v44 }
 0x11d   :  { %766 = vmatmul.mubr.bf16.vlgmr.msra.gmra.mxu0 %v345_v45 }
 0x11e   :  { %1179 = vmatpush3.bf16.msra.mxu0 %v1335_v63 }
 0x11f   :  { %v274_v48 = vpop.f32.mrf.mxu1  ;;  %1180 = vmatprep.subr.bf16.mxu0 %v1336_v1 }
 0x121   :  { %v276_v51 = vpop.f32.mrf.mxu1 }
 0x122   :  { %1181 = vmatpush3.bf16.msra.mxu0 %v1337_v2 }
 0x123   :  { %v278_v52 = vpop.f32.mrf.mxu1  ;;  %1182 = vmatprep.subr.bf16.mxu0 %v1338_v3 }
 0x124   :  { %v285_v54 = vpack.c.bf16 %v278_v52, %v274_v48 }
 0x125   :  { %v280_v56 = vpop.f32.mrf.mxu1 }
 0x126   :  { %v286_v57 = vpack.c.bf16 %v280_v56, %v276_v51  ;;  %v343_v58 = vadd.bf16 %v333_v53, %v285_v54  ;;  %1183 = vmatpush3.bf16.msra.mxu0 %v1339_v4 }
 0x127   :  { %1184 = vmatprep.subr.bf16.mxu0 %v1340_v5 }
 0x128   :  { %v344_v59 = vadd.bf16 %v340_v55, %v286_v57  ;;  %v347_v61 = vmax.bf16 %v1489_v0, %v343_v58 }
 0x12a   :  { %v348_v60 = vmax.bf16 %v1489_v0, %v344_v59  ;;  %1185 = vmatpush3.bf16.msra.mxu0 %v1341_v6 }
 0x12b   :  { %1186 = vmatprep.subr.bf16.mxu0 %v1342_v7 }
 0x12c   :  { %808 = vmatprep.mubr.bf16.mxu1 %v348_v60 }
 0x12d   :  { %809 = vmatmul.mubr.bf16.vlgmr.msra.gmra.mxu1 %v347_v61 }
 0x12e   :  { %1187 = vmatpush3.bf16.msra.mxu0 %v1343_v8 }
 0x12f   :  { %1188 = vmatprep.subr.bf16.mxu0 %v1344_v9 }
 0x132   :  { %1189 = vmatpush3.bf16.msra.mxu0 %v1345_v10 }
 0x133   :  { %1190 = vmatprep.subr.bf16.mxu0 %v1346_v11 }
 0x136   :  { %1191 = vmatpush3.bf16.msra.mxu0 %v1347_v12 }
 0x137   :  { %1192 = vmatprep.subr.bf16.mxu0 %v1348_v13 }
 0x13a   :  { %1193 = vmatpush3.bf16.msra.mxu0 %v1349_v14 }
 0x1dd   :  { %v767_v16 = vpop.f32.mrf.mxu0 }
 0x1df   :  { %v769_v18 = vpop.f32.mrf.mxu0 }
 0x1e1   :  { %v771_v22 = vpop.f32.mrf.mxu0 }
 0x1e3   :  { %v773_v30 = vpop.f32.mrf.mxu0 }
 0x1ed   :  { %v810_v21 = vpop.f32.mrf.mxu1 }
 0x1ee   :  { %v811_v28 = vadd.f32 %v810_v21, %v767_v16 }
 0x1ef   :  { %v812_v23 = vpop.f32.mrf.mxu1 }
 0x1f0   :  { %v813_v34 = vadd.f32 %v812_v23, %v769_v18 }
 0x1f1   :  { %v814_v26 = vpop.f32.mrf.mxu1 }
 0x1f2   :  { %v815_v29 = vadd.f32 %v814_v26, %v771_v22 }
 0x1f3   :  { %v816_v32 = vpop.f32.mrf.mxu1 }
 0x1f4   :  { %v819_v35 = vpack.c.bf16 %v815_v29, %v811_v28  ;;  %v817_v36 = vadd.f32 %v816_v32, %v773_v30 }
 0x1f6   :  { %v820_v38 = vpack.c.bf16 %v817_v36, %v813_v34  ;;  %v859_v39 = vadd.bf16 %v851_v31, %v819_v35 }
 0x1f8   :  { %v860_v27 = vadd.bf16 %v858_v37, %v820_v38  ;;  %v861_v41 = vmax.bf16 %v1489_v0, %v859_v39 }
 0x1fa   :  { %v862_v40 = vmax.bf16 %v1489_v0, %v860_v27 }
 0x1fc   :  { %1030 = vmatprep.mubr.bf16.mxu0 %v862_v40 }
 0x1fd   :  { %1031 = vmatmul.mubr.bf16.vlgmr.msra.gmra.mxu0 %v861_v41 }
 0x2bd   :  { %v1194_v42 = vpop.f32.mrf.mxu0 }
 0x2bf   :  { %v1195_v43 = vpop.f32.mrf.mxu0 }
 0x2c0   :  { %v1196_v45 = vadd.f32 %v1195_v43, %v1194_v42 }
 0x2c1   :  { %v1197_v44 = vpop.f32.mrf.mxu0 }
 0x2c2   :  { %v1033_v33 = vadd.f32 %v1196_v45, %v1152_v46 }
 0x2c3   :  { %v1198_v47 = vpop.f32.mrf.mxu0 }
 0x2c4   :  { %v1199_v48 = vadd.f32 %v1198_v47, %v1197_v44 }
 0x2c6   :  { %v1036_v49 = vadd.f32 %v1199_v48, %v1152_v46 }
 0x2c8   :  { %v1176_v50 = vpack.c.bf16 %v1036_v49, %v1033_v33 }
 0x2ca   :  { %1177 = vst [vmem:[#allocation11] sm:$0xff] %v1176_v50  }
 0x2cb   :  { %1461 = shalt.err (!%p1458_p1)
}
 0x2cc   :  { %1060 = dma.vmem_to_hbm [thread:$0]  %s1055_s8, 128, %s1593_s7, [#allocation4], %s1487_s0, %s1487_s0, %s1488_s26  }
 0x2cd   :  { %1476 = dma.done.wait [#allocation4], 128  }
 0x2ce   :  { %1477 = vsyncadd [#allocation4], 4294967168 }
 0x2cf   :  { %1064 = vsyncpa [#allocation3], 1 }
 0x2d0   :  { %1065 = vsyncpa [#allocation6], 1 }
 0x2d1   :  { %1066 = vsyncpa [#allocation9], 1 }
 0x2d2   :  { %1067 = vsyncpa [#allocation4], 1 }

</bundles_post_ra>
